<compile_context>
chip_gen: v7x
topology: tpu7x:2x2x1
jax: 0.10.0
libtpu: 0.0.40
codegen_flags: <defaults>
</compile_context>

<pallas_src>
import jax
import jax.numpy as jnp
from jax.experimental import pallas as pl
from jax.experimental.pallas import tpu as pltpu
from jax.scipy.linalg import block_diag


# --------------------------------------------------------------------------- #
# Kernel
# --------------------------------------------------------------------------- #
def critic_kernel(x_ref, w1_ref, w2_ref, wmid_ref, w6_ref,
                  bsm_ref, bmid_ref, b7_ref, out_ref):
    """Fused Critic forward on one (R*F, cols) tile (cols = TILE_M / R).

    x_ref    : (R*F,  cols)  bf16   input features, R row-subtiles on sublanes
    w1_ref   : (R*32, R*F)   bf16   embedding folded into layer 1, block-diag
    w2_ref   : (R*64, R*32)  bf16   layer 2, block-diag
    wmid_ref : (3, R*64, R*64) bf16 layers 3..5, block-diag
    w6_ref   : (R*32, R*64)  bf16   layer 6, block-diag
    bsm_ref  : (3, R*32, 1)  f32    [b1, b6, w7-column]
    bmid_ref : (4, R*64, 1)  f32    [b2, b3, b4, b5]
    b7_ref   : (1, 1)        f32    final bias
    out_ref  : (R, cols)     f32    one reward row per subtile
    """
    cdt = w1_ref.dtype                      # bf16 matmul operand dtype
    R = out_ref.shape[0]

    def layer(h, w, b):
        # (R*out, R*in) @ (R*in, cols) -> f32 MXU accumulate; bias+ReLU on VPU
        # in f32 (correct on v5e, tighter accuracy; MXU is the binding unit).
        acc = jnp.dot(w, h, preferred_element_type=jnp.float32)
        return jnp.maximum(acc + b, 0.0)

    x = x_ref[...]                                           # (R*F, cols) bf16
    h = layer(x, w1_ref[...], bsm_ref[0]).astype(cdt)        # (R*32, cols)
    # TODO(synk): Dropout(p=0.2) treated as identity (eval-mode semantics only).
    h = layer(h, w2_ref[...], bmid_ref[0]).astype(cdt)       # (R*64, cols)
    for l in range(3):                                       # layers 3..5
        h = layer(h, wmid_ref[l], bmid_ref[l + 1]).astype(cdt)
    h = layer(h, w6_ref[...], bsm_ref[1])                    # (R*32, cols) f32

    # Final Linear(32 -> 1): VPU multiply + per-subtile sublane reduce (no
    # mostly-empty N=R MXU matmul).  Result stays lane-dense as (R, cols).
    hw = h * bsm_ref[2]                                      # (R*32, cols)
    n = hw.shape[0] // R
    rows = [jnp.sum(hw[r * n:(r + 1) * n, :], axis=0, keepdims=True)
            for r in range(R)]
    out = jnp.concatenate(rows, axis=0) + b7_ref[...]        # (R, cols)
    out_ref[...] = out.astype(out_ref.dtype)


# --------------------------------------------------------------------------- #
# Wrapper helpers
# --------------------------------------------------------------------------- #
def _choose_tiling(M, R, max_tile_m=1024, lane=128):
    """Pick tile_m (multiple of R*128) minimizing padding; prefer >=2 grid
    steps (megacore on v7x) and, on ties, fewer steps (amortize per-step cost)."""
    unit = R * lane
    m_units = max(1, -(-M // unit))
    max_upt = max(1, max_tile_m // unit)
    min_tiles = 2 if m_units >= 2 else 1
    best = None
    for upt in range(1, max_upt + 1):                 # units per tile
        n_tiles = -(-m_units // upt)
        if n_tiles < min_tiles:
            continue
        key = (n_tiles * upt, n_tiles)                # (padded units, #steps)
        if best is None or key < best[0]:
            best = (key, upt, n_tiles)
    _, upt, n_tiles = best
    tile_m = upt * unit
    return tile_m, n_tiles * tile_m, n_tiles


def make_critic_params(key, num_features=4, c_embed=16, dtype=jnp.float32):
    """PyTorch-style init: weight (out, in), bias (out,), ~U(-1/sqrt(in), 1/sqrt(in))."""
    dims = [(num_features, c_embed, False),           # Embedding Linear(4->16, no bias)
            (c_embed, 32, True), (32, 64, True), (64, 64, True), (64, 64, True),
            (64, 64, True), (64, 32, True), (32, 1, True)]
    keys = jax.random.split(key, len(dims))
    params = []
    for k, (fi, fo, has_b) in zip(keys, dims):
        kw, kb = jax.random.split(k)
        bound = 1.0 / float(fi) ** 0.5
        w = jax.random.uniform(kw, (fo, fi), dtype, -bound, bound)
        b = jax.random.uniform(kb, (fo,), dtype, -bound, bound) if has_b else None
        params.append((w, b))
    return params


def critic_forward(intersections, params, *, r_pack=4, max_tile_m=1024,
                   compute_dtype=jnp.bfloat16):
    """intersections: (B, S, num_features) f32 -> (B, S) f32 (== rewards[:, :, 0]).

    r_pack: MXU block-diagonal replication factor (4 for v6e/v7x, 2 for v5e).
    """
    B, S, F = intersections.shape
    M = B * S
    R = max(1, int(r_pack))

    tile_m, m_pad, n_tiles = _choose_tiling(M, R, max_tile_m)
    sub = tile_m // R                                   # lanes per subtile

    # ---- layout plumbing (single fused pad/reshape/transpose/cast pass) ----
    # Rows of tile i, subtile r, offset j live at sublane block r, lane column
    # i*sub + j.  Features map to sublanes r*F + f.
    xT = (jnp.pad(intersections.reshape(M, F), ((0, m_pad - M), (0, 0)))
            .reshape(n_tiles, R, sub, F)
            .transpose(1, 3, 0, 2)                      # (R, F, n_tiles, sub)
            .reshape(R * F, n_tiles * sub)
            .astype(compute_dtype))

    (we, _), (w1, b1), (w2, b2), (w3, b3), (w4, b4), (w5, b5), (w6, b6), (w7, b7) = params

    # Fold the bias-free embedding into layer 1 (exact; done in f32 before any
    # bf16 rounding).
    w01 = w1.astype(jnp.float32) @ we.astype(jnp.float32)          # (32, F)

    def bd(w):                                          # block-diag, R copies, bf16
        w = w.astype(jnp.float32)
        return block_diag(*([w] * R)).astype(compute_dtype)

    def bt(v):                                          # bias column tiled R times, f32
        return jnp.tile(v.astype(jnp.float32).reshape(-1, 1), (R, 1))

    w1bd = bd(w01)                                      # (R*32, R*F)
    w2bd = bd(w2)                                       # (R*64, R*32)
    wmid = jnp.stack([bd(w3), bd(w4), bd(w5)])          # (3, R*64, R*64)
    w6bd = bd(w6)                                       # (R*32, R*64)
    bsm = jnp.stack([bt(b1), bt(b6), bt(w7)])           # (3, R*32, 1) [b1, b6, w7]
    bmid = jnp.stack([bt(b2), bt(b3), bt(b4), bt(b5)])  # (4, R*64, 1)
    b7t = b7.astype(jnp.float32).reshape(1, 1)          # (1, 1)

    flat = [w1bd, w2bd, wmid, w6bd, bsm, bmid, b7t]

    def resident(a):                                    # same block every grid step
        nd = a.ndim
        return pl.BlockSpec(a.shape, lambda i, nd=nd: (0,) * nd)

    in_specs = [pl.BlockSpec((R * F, sub), lambda i: (0, i))] + [resident(a) for a in flat]
    out_spec = pl.BlockSpec((R, sub), lambda i: (0, i))

    flops_per_row = 2 * (32 * F + 64 * 32 + 3 * 64 * 64 + 32 * 64 + 32)
    cost = pl.CostEstimate(
        flops=flops_per_row * m_pad,
        transcendentals=0,
        bytes_accessed=int(xT.size) * xT.dtype.itemsize + 4 * m_pad
        + sum(int(a.size) * a.dtype.itemsize for a in flat),
    )

    out = pl.pallas_call(
        critic_kernel,
        grid=(n_tiles,),
        in_specs=in_specs,
        out_specs=out_spec,
        out_shape=jax.ShapeDtypeStruct((R, n_tiles * sub), jnp.float32),
        compiler_params=pltpu.CompilerParams(
            dimension_semantics=("parallel",),          # megacore-shardable on v7x
        ),
        cost_estimate=cost,
    )(xT, *flat)

    # Undo the subtile packing: (R, n_tiles*sub) -> (m_pad,) -> (B, S).
    rewards = (out.reshape(R, n_tiles, sub)
                  .transpose(1, 0, 2)                   # (n_tiles, R, sub)
                  .reshape(m_pad)[:M]
                  .reshape(B, S))
    return rewards


def critic_reference(intersections, params):
    """Pure-JAX f32 reference (eval-mode PyTorch semantics)."""
    (we, _), *layers = params
    B, S, F = intersections.shape
    h = intersections.reshape(B * S, F) @ we.T
    for idx, (w, b) in enumerate(layers):
        h = h @ w.T + b
        if idx < len(layers) - 1:
            h = jnp.maximum(h, 0.0)
    return h.reshape(B, S)


if __name__ == "__main__":
    key = jax.random.PRNGKey(0)
    k_params, k_input = jax.random.split(key)

    B, S, F = 2, 8, 4  # batch=2, seq=8, num_features=4 (Critic defaults)
    params = make_critic_params(k_params, num_features=F, c_embed=16)
    intersections = jax.random.normal(k_input, (B, S, F), dtype=jnp.float32)

    rewards = critic_forward(intersections, params)     # r_pack=4 (v6e/v7x); use 2 on v5e
    rewards = jax.block_until_ready(rewards)

    assert rewards.shape == (B, S), rewards.shape
    assert rewards.dtype == jnp.float32

    # Sanity check vs. f32 reference (loose tolerance: bf16 matmul operands).
    ref = critic_reference(intersections, params)
    assert jnp.allclose(rewards, ref, rtol=5e-2, atol=5e-2), (
        float(jnp.max(jnp.abs(rewards - ref))))

    print("KERNEL_OK")
</pallas_src>

<mosaic_0001>
module attributes {stable_mosaic.version = 11 : i64} {
  func.func @critic_kernel(%arg0: i32, %arg1: memref<16x128xbf16, #tpu.memory_space<vmem>>, %arg2: memref<128x16xbf16, #tpu.memory_space<vmem>>, %arg3: memref<256x128xbf16, #tpu.memory_space<vmem>>, %arg4: memref<3x256x256xbf16, #tpu.memory_space<vmem>>, %arg5: memref<128x256xbf16, #tpu.memory_space<vmem>>, %arg6: memref<3x128x1xf32, #tpu.memory_space<vmem>>, %arg7: memref<4x256x1xf32, #tpu.memory_space<vmem>>, %arg8: memref<1x1xf32, #tpu.memory_space<vmem>>, %arg9: memref<4x128xf32, #tpu.memory_space<vmem>>) attributes {dimension_semantics = [#tpu.dimension_semantics<parallel>], iteration_bounds = array<i64: 1>, scalar_prefetch = 0 : i64, scratch_operands = 0 : i64, tpu.core_type = #tpu.core_type<tc>, window_params = [{transform_indices = @transform_0, window_bounds = array<i64: 16, 128>}, {pipeline_mode = #tpu.pipeline_mode<synchronous>, transform_indices = @transform_1, window_bounds = array<i64: 128, 16>}, {pipeline_mode = #tpu.pipeline_mode<synchronous>, transform_indices = @transform_2, window_bounds = array<i64: 256, 128>}, {pipeline_mode = #tpu.pipeline_mode<synchronous>, transform_indices = @transform_3, window_bounds = array<i64: 3, 256, 256>}, {pipeline_mode = #tpu.pipeline_mode<synchronous>, transform_indices = @transform_4, window_bounds = array<i64: 128, 256>}, {pipeline_mode = #tpu.pipeline_mode<synchronous>, transform_indices = @transform_5, window_bounds = array<i64: 3, 128, 1>}, {pipeline_mode = #tpu.pipeline_mode<synchronous>, transform_indices = @transform_6, window_bounds = array<i64: 4, 256, 1>}, {pipeline_mode = #tpu.pipeline_mode<synchronous>, transform_indices = @transform_7, window_bounds = array<i64: 1, 1>}, {transform_indices = @transform_8, window_bounds = array<i64: 4, 128>}]} {
    %c0 = arith.constant 0 : index
    %c0_0 = arith.constant 0 : index
    %0 = vector.load %arg1[%c0, %c0_0] : memref<16x128xbf16, #tpu.memory_space<vmem>>, vector<16x128xbf16>
    %c0_1 = arith.constant 0 : index
    %c0_2 = arith.constant 0 : index
    %1 = vector.load %arg2[%c0_1, %c0_2] : memref<128x16xbf16, #tpu.memory_space<vmem>>, vector<128x16xbf16>
    %c0_3 = arith.constant 0 : index
    %c0_4 = arith.constant 0 : index
    %c0_5 = arith.constant 0 : index
    %2 = vector.load %arg6[%c0_3, %c0_4, %c0_5] : memref<3x128x1xf32, #tpu.memory_space<vmem>>, vector<1x128x1xf32>
    %3 = vector.shape_cast %2 : vector<1x128x1xf32> to vector<128x1xf32>
    %cst = arith.constant dense<0.000000e+00> : vector<128x128xf32>
    %4 = tpu.matmul %1, %0, %cst {dimension_numbers = #tpu.dot_dimension_numbers<[1], [0], [0], [1], [0, 0, 1, 1], [], []>} : vector<128x16xbf16>, vector<16x128xbf16>, vector<128x128xf32> -> vector<128x128xf32>
    %5 = vector.broadcast %3 : vector<128x1xf32> to vector<128x128xf32>
    %6 = arith.addf %4, %5 : vector<128x128xf32>
    %cst_6 = arith.constant 0.000000e+00 : f32
    %7 = vector.broadcast %cst_6 : f32 to vector<128x128xf32>
    %8 = arith.maximumf %6, %7 : vector<128x128xf32>
    %9 = arith.truncf %8 : vector<128x128xf32> to vector<128x128xbf16>
    %c0_7 = arith.constant 0 : index
    %c0_8 = arith.constant 0 : index
    %10 = vector.load %arg3[%c0_7, %c0_8] : memref<256x128xbf16, #tpu.memory_space<vmem>>, vector<256x128xbf16>
    %c0_9 = arith.constant 0 : index
    %c0_10 = arith.constant 0 : index
    %c0_11 = arith.constant 0 : index
    %11 = vector.load %arg7[%c0_9, %c0_10, %c0_11] : memref<4x256x1xf32, #tpu.memory_space<vmem>>, vector<1x256x1xf32>
    %12 = vector.shape_cast %11 : vector<1x256x1xf32> to vector<256x1xf32>
    %cst_12 = arith.constant dense<0.000000e+00> : vector<256x128xf32>
    %13 = tpu.matmul %10, %9, %cst_12 {dimension_numbers = #tpu.dot_dimension_numbers<[1], [0], [0], [1], [0, 0, 1, 1], [], []>} : vector<256x128xbf16>, vector<128x128xbf16>, vector<256x128xf32> -> vector<256x128xf32>
    %14 = vector.broadcast %12 : vector<256x1xf32> to vector<256x128xf32>
    %15 = arith.addf %13, %14 : vector<256x128xf32>
    %cst_13 = arith.constant 0.000000e+00 : f32
    %16 = vector.broadcast %cst_13 : f32 to vector<256x128xf32>
    %17 = arith.maximumf %15, %16 : vector<256x128xf32>
    %18 = arith.truncf %17 : vector<256x128xf32> to vector<256x128xbf16>
    %c0_14 = arith.constant 0 : index
    %c0_15 = arith.constant 0 : index
    %c0_16 = arith.constant 0 : index
    %19 = vector.load %arg4[%c0_14, %c0_15, %c0_16] : memref<3x256x256xbf16, #tpu.memory_space<vmem>>, vector<1x256x256xbf16>
    %20 = vector.shape_cast %19 : vector<1x256x256xbf16> to vector<256x256xbf16>
    %c1 = arith.constant 1 : index
    %c0_17 = arith.constant 0 : index
    %c0_18 = arith.constant 0 : index
    %21 = vector.load %arg7[%c1, %c0_17, %c0_18] : memref<4x256x1xf32, #tpu.memory_space<vmem>>, vector<1x256x1xf32>
    %22 = vector.shape_cast %21 : vector<1x256x1xf32> to vector<256x1xf32>
    %cst_19 = arith.constant dense<0.000000e+00> : vector<256x128xf32>
    %23 = tpu.matmul %20, %18, %cst_19 {dimension_numbers = #tpu.dot_dimension_numbers<[1], [0], [0], [1], [0, 0, 1, 1], [], []>} : vector<256x256xbf16>, vector<256x128xbf16>, vector<256x128xf32> -> vector<256x128xf32>
    %24 = vector.broadcast %22 : vector<256x1xf32> to vector<256x128xf32>
    %25 = arith.addf %23, %24 : vector<256x128xf32>
    %cst_20 = arith.constant 0.000000e+00 : f32
    %26 = vector.broadcast %cst_20 : f32 to vector<256x128xf32>
    %27 = arith.maximumf %25, %26 : vector<256x128xf32>
    %28 = arith.truncf %27 : vector<256x128xf32> to vector<256x128xbf16>
    %c1_21 = arith.constant 1 : index
    %c0_22 = arith.constant 0 : index
    %c0_23 = arith.constant 0 : index
    %29 = vector.load %arg4[%c1_21, %c0_22, %c0_23] : memref<3x256x256xbf16, #tpu.memory_space<vmem>>, vector<1x256x256xbf16>
    %30 = vector.shape_cast %29 : vector<1x256x256xbf16> to vector<256x256xbf16>
    %c2 = arith.constant 2 : index
    %c0_24 = arith.constant 0 : index
    %c0_25 = arith.constant 0 : index
    %31 = vector.load %arg7[%c2, %c0_24, %c0_25] : memref<4x256x1xf32, #tpu.memory_space<vmem>>, vector<1x256x1xf32>
    %32 = vector.shape_cast %31 : vector<1x256x1xf32> to vector<256x1xf32>
    %cst_26 = arith.constant dense<0.000000e+00> : vector<256x128xf32>
    %33 = tpu.matmul %30, %28, %cst_26 {dimension_numbers = #tpu.dot_dimension_numbers<[1], [0], [0], [1], [0, 0, 1, 1], [], []>} : vector<256x256xbf16>, vector<256x128xbf16>, vector<256x128xf32> -> vector<256x128xf32>
    %34 = vector.broadcast %32 : vector<256x1xf32> to vector<256x128xf32>
    %35 = arith.addf %33, %34 : vector<256x128xf32>
    %cst_27 = arith.constant 0.000000e+00 : f32
    %36 = vector.broadcast %cst_27 : f32 to vector<256x128xf32>
    %37 = arith.maximumf %35, %36 : vector<256x128xf32>
    %38 = arith.truncf %37 : vector<256x128xf32> to vector<256x128xbf16>
    %c2_28 = arith.constant 2 : index
    %c0_29 = arith.constant 0 : index
    %c0_30 = arith.constant 0 : index
    %39 = vector.load %arg4[%c2_28, %c0_29, %c0_30] : memref<3x256x256xbf16, #tpu.memory_space<vmem>>, vector<1x256x256xbf16>
    %40 = vector.shape_cast %39 : vector<1x256x256xbf16> to vector<256x256xbf16>
    %c3 = arith.constant 3 : index
    %c0_31 = arith.constant 0 : index
    %c0_32 = arith.constant 0 : index
    %41 = vector.load %arg7[%c3, %c0_31, %c0_32] : memref<4x256x1xf32, #tpu.memory_space<vmem>>, vector<1x256x1xf32>
    %42 = vector.shape_cast %41 : vector<1x256x1xf32> to vector<256x1xf32>
    %cst_33 = arith.constant dense<0.000000e+00> : vector<256x128xf32>
    %43 = tpu.matmul %40, %38, %cst_33 {dimension_numbers = #tpu.dot_dimension_numbers<[1], [0], [0], [1], [0, 0, 1, 1], [], []>} : vector<256x256xbf16>, vector<256x128xbf16>, vector<256x128xf32> -> vector<256x128xf32>
    %44 = vector.broadcast %42 : vector<256x1xf32> to vector<256x128xf32>
    %45 = arith.addf %43, %44 : vector<256x128xf32>
    %cst_34 = arith.constant 0.000000e+00 : f32
    %46 = vector.broadcast %cst_34 : f32 to vector<256x128xf32>
    %47 = arith.maximumf %45, %46 : vector<256x128xf32>
    %48 = arith.truncf %47 : vector<256x128xf32> to vector<256x128xbf16>
    %c0_35 = arith.constant 0 : index
    %c0_36 = arith.constant 0 : index
    %49 = vector.load %arg5[%c0_35, %c0_36] : memref<128x256xbf16, #tpu.memory_space<vmem>>, vector<128x256xbf16>
    %c1_37 = arith.constant 1 : index
    %c0_38 = arith.constant 0 : index
    %c0_39 = arith.constant 0 : index
    %50 = vector.load %arg6[%c1_37, %c0_38, %c0_39] : memref<3x128x1xf32, #tpu.memory_space<vmem>>, vector<1x128x1xf32>
    %51 = vector.shape_cast %50 : vector<1x128x1xf32> to vector<128x1xf32>
    %cst_40 = arith.constant dense<0.000000e+00> : vector<128x128xf32>
    %52 = tpu.matmul %49, %48, %cst_40 {dimension_numbers = #tpu.dot_dimension_numbers<[1], [0], [0], [1], [0, 0, 1, 1], [], []>} : vector<128x256xbf16>, vector<256x128xbf16>, vector<128x128xf32> -> vector<128x128xf32>
    %53 = vector.broadcast %51 : vector<128x1xf32> to vector<128x128xf32>
    %54 = arith.addf %52, %53 : vector<128x128xf32>
    %cst_41 = arith.constant 0.000000e+00 : f32
    %55 = vector.broadcast %cst_41 : f32 to vector<128x128xf32>
    %56 = arith.maximumf %54, %55 : vector<128x128xf32>
    %c2_42 = arith.constant 2 : index
    %c0_43 = arith.constant 0 : index
    %c0_44 = arith.constant 0 : index
    %57 = vector.load %arg6[%c2_42, %c0_43, %c0_44] : memref<3x128x1xf32, #tpu.memory_space<vmem>>, vector<1x128x1xf32>
    %58 = vector.shape_cast %57 : vector<1x128x1xf32> to vector<128x1xf32>
    %59 = vector.broadcast %58 : vector<128x1xf32> to vector<128x128xf32>
    %60 = arith.mulf %56, %59 : vector<128x128xf32>
    %61 = vector.extract_strided_slice %60 {offsets = [0, 0], sizes = [32, 128], strides = [1, 1]} : vector<128x128xf32> to vector<32x128xf32>
    %cst_45 = arith.constant dense<0.000000e+00> : vector<128xf32>
    %62 = vector.multi_reduction <add>, %61, %cst_45 [0] : vector<32x128xf32> to vector<128xf32>
    %63 = vector.shape_cast %62 : vector<128xf32> to vector<1x128xf32>
    %64 = vector.extract_strided_slice %60 {offsets = [32, 0], sizes = [32, 128], strides = [1, 1]} : vector<128x128xf32> to vector<32x128xf32>
    %cst_46 = arith.constant dense<0.000000e+00> : vector<128xf32>
    %65 = vector.multi_reduction <add>, %64, %cst_46 [0] : vector<32x128xf32> to vector<128xf32>
    %66 = vector.shape_cast %65 : vector<128xf32> to vector<1x128xf32>
    %67 = vector.extract_strided_slice %60 {offsets = [64, 0], sizes = [32, 128], strides = [1, 1]} : vector<128x128xf32> to vector<32x128xf32>
    %cst_47 = arith.constant dense<0.000000e+00> : vector<128xf32>
    %68 = vector.multi_reduction <add>, %67, %cst_47 [0] : vector<32x128xf32> to vector<128xf32>
    %69 = vector.shape_cast %68 : vector<128xf32> to vector<1x128xf32>
    %70 = vector.extract_strided_slice %60 {offsets = [96, 0], sizes = [32, 128], strides = [1, 1]} : vector<128x128xf32> to vector<32x128xf32>
    %cst_48 = arith.constant dense<0.000000e+00> : vector<128xf32>
    %71 = vector.multi_reduction <add>, %70, %cst_48 [0] : vector<32x128xf32> to vector<128xf32>
    %72 = vector.shape_cast %71 : vector<128xf32> to vector<1x128xf32>
    %73 = tpu.concatenate %63, %66, %69, %72 in 0 : vector<1x128xf32>, vector<1x128xf32>, vector<1x128xf32>, vector<1x128xf32> -> vector<4x128xf32>
    %c0_49 = arith.constant 0 : index
    %c0_50 = arith.constant 0 : index
    %74 = vector.load %arg8[%c0_49, %c0_50] : memref<1x1xf32, #tpu.memory_space<vmem>>, vector<1x1xf32>
    %75 = vector.broadcast %74 : vector<1x1xf32> to vector<4x128xf32>
    %76 = arith.addf %73, %75 : vector<4x128xf32>
    %c0_51 = arith.constant 0 : index
    %c0_52 = arith.constant 0 : index
    %77 = vector.load %arg9[%c0_51, %c0_52] : memref<4x128xf32, #tpu.memory_space<vmem>>, vector<4x128xf32>
    tpu.vector_store %arg9[%c0_51, %c0_52], %76 {strides = array<i32>} : memref<4x128xf32, #tpu.memory_space<vmem>>, vector<4x128xf32>,
    return
  }
  func.func @transform_0(%arg0: i32) -> (i32, i32) {
    %c0_i32 = arith.constant 0 : i32
    %c0_i32_0 = arith.constant 0 : i32
    return %c0_i32, %arg0 : i32, i32
  }
  func.func @transform_1(%arg0: i32) -> (i32, i32) {
    %c0_i32 = arith.constant 0 : i32
    %c0_i32_0 = arith.constant 0 : i32
    %c0_i32_1 = arith.constant 0 : i32
    return %c0_i32, %c0_i32_0 : i32, i32
  }
  func.func @transform_2(%arg0: i32) -> (i32, i32) {
    %c0_i32 = arith.constant 0 : i32
    %c0_i32_0 = arith.constant 0 : i32
    %c0_i32_1 = arith.constant 0 : i32
    return %c0_i32, %c0_i32_0 : i32, i32
  }
  func.func @transform_3(%arg0: i32) -> (i32, i32, i32) {
    %c0_i32 = arith.constant 0 : i32
    %c0_i32_0 = arith.constant 0 : i32
    %c0_i32_1 = arith.constant 0 : i32
    %c0_i32_2 = arith.constant 0 : i32
    return %c0_i32, %c0_i32_0, %c0_i32_1 : i32, i32, i32
  }
  func.func @transform_4(%arg0: i32) -> (i32, i32) {
    %c0_i32 = arith.constant 0 : i32
    %c0_i32_0 = arith.constant 0 : i32
    %c0_i32_1 = arith.constant 0 : i32
    return %c0_i32, %c0_i32_0 : i32, i32
  }
  func.func @transform_5(%arg0: i32) -> (i32, i32, i32) {
    %c0_i32 = arith.constant 0 : i32
    %c0_i32_0 = arith.constant 0 : i32
    %c0_i32_1 = arith.constant 0 : i32
    %c0_i32_2 = arith.constant 0 : i32
    return %c0_i32, %c0_i32_0, %c0_i32_1 : i32, i32, i32
  }
  func.func @transform_6(%arg0: i32) -> (i32, i32, i32) {
    %c0_i32 = arith.constant 0 : i32
    %c0_i32_0 = arith.constant 0 : i32
    %c0_i32_1 = arith.constant 0 : i32
    %c0_i32_2 = arith.constant 0 : i32
    return %c0_i32, %c0_i32_0, %c0_i32_1 : i32, i32, i32
  }
  func.func @transform_7(%arg0: i32) -> (i32, i32) {
    %c0_i32 = arith.constant 0 : i32
    %c0_i32_0 = arith.constant 0 : i32
    %c0_i32_1 = arith.constant 0 : i32
    return %c0_i32, %c0_i32_0 : i32, i32
  }
  func.func @transform_8(%arg0: i32) -> (i32, i32) {
    %c0_i32 = arith.constant 0 : i32
    %c0_i32_0 = arith.constant 0 : i32
    return %c0_i32, %arg0 : i32, i32
  }
}

</mosaic_0001>

<bundles_post_ra>
// kernel: tpu_custom_call.1
= control target key start
LH: loop header
LB: loop body
LE: loop exit
PB: predicated region body
PF: predicated region fallthrough
CT: control target
= control target key end

     0   :  { %s5677_s0 = inlined_call_operand.vmem [shape: bf16[16,128], index: 0, kind: input, shape index: {}]   ;;  %s5678_s1 = inlined_call_operand.vmem [shape: bf16[128,16], index: 1, kind: input, shape index: {}]   ;;  %s5679_s2 = inlined_call_operand.vmem [shape: bf16[256,128], index: 2, kind: input, shape index: {}]   ;;  %s5680_s3 = inlined_call_operand.vmem [shape: bf16[3,256,256], index: 3, kind: input, shape index: {}]   ;;  %s5681_s4 = inlined_call_operand.vmem [shape: bf16[128,256], index: 4, kind: input, shape index: {}]   ;;  %s5682_s5 = inlined_call_operand.vmem [shape: f32[3,128,1], index: 5, kind: input, shape index: {}]   ;;  %s5683_s6 = inlined_call_operand.vmem [shape: f32[4,256,1], index: 6, kind: input, shape index: {}]   ;;  %s5684_s7 = inlined_call_operand.<no memory space> [shape: f32[1,1], index: 7, kind: input, shape index: {}]   ;;  %s5685_s8 = inlined_call_operand.hbm [shape: f32[4,128], index: 8, kind: output, shape index: {}]  }
   0x1   :  { %v13_v0 = vstv %s5684_s7 }
   0x2   :  { %14 = vst [vmem:[#allocation2] sm:$0x1] %v13_v0 }
   0x3   :  { %v53_v1 = vld [vmem:[%s5682_s5 + $0x10] sm:$0xff]  ;;  %v51_v2 = vld [vmem:[%s5682_s5] sm:$0xff]  ;;  %v4197_v3 = vmov 0   ;;  %v54_v5 = vld [vmem:[%s5682_s5 + $0x18] sm:$0xff]  ;;  %vm193_vm0 = vcmask 130048  }
   0x4   :  { %3979 = vset.pattern.permute.xlu1 %v4197_v3  ;;  %3978 = vset.pattern.permute.xlu0 %v4197_v3  ;;  %v3980_v4 = vld [vmem:[%s5677_s0] sm:$0xff]   ;;  %v52_v6 = vld [vmem:[%s5682_s5 + $0x8] sm:$0xff]  ;;  %v3983_v9 = vld [vmem:[%s5678_s1 + $0x10] sm:$0xff]  }
   0x5   :  { %79 = vperm.xlu1 %3979, %v53_v1   ;;  %69 = vperm.xlu0 %3978, %v51_v2   ;;  %v3981_v7 = vld [vmem:[%s5678_s1] sm:$0xff]   ;;  %v3982_v8 = vld [vmem:[%s5678_s1 + $0x8] sm:$0xff]   ;;  %v58_v12 = vld [vmem:[%s5682_s5 + $0x38] sm:$0xff] }
   0x6   :  { %3910 = vmatprep.subr.bf16.mxu0 %v3980_v4  ;;  %3912 = vmatprep.mubr.msk.bf16.mxu0 %vm193_vm0, %v3981_v7  ;;  %v56_v10 = vld [vmem:[%s5682_s5 + $0x28] sm:$0xff]  ;;  %v55_v11 = vld [vmem:[%s5682_s5 + $0x20] sm:$0xff]  ;;  %v57_v13 = vld [vmem:[%s5682_s5 + $0x30] sm:$0xff] }
   0x7   :  { %3911 = vmatpush3.bf16.msra.mxu0 %v3980_v4  ;;  %v3984_v14 = vld [vmem:[%s5678_s1 + $0x18] sm:$0xff]   ;;  %v3985_v15 = vld [vmem:[%s5678_s1 + $0x20] sm:$0xff]   ;;  %v60_v16 = vld [vmem:[%s5682_s5 + $0x48] sm:$0xff] }
   0x8   :  { %v59_v17 = vld [vmem:[%s5682_s5 + $0x40] sm:$0xff]  ;;  %v62_v18 = vld [vmem:[%s5682_s5 + $0x58] sm:$0xff]  ;;  %v61_v19 = vld [vmem:[%s5682_s5 + $0x50] sm:$0xff] }
   0x9   :  { %84 = vperm.xlu1 %3979, %v54_v5   ;;  %74 = vperm.xlu0 %3978, %v52_v6   ;;  %v3986_v20 = vld [vmem:[%s5678_s1 + $0x28] sm:$0xff]   ;;  %v3987_v21 = vld [vmem:[%s5678_s1 + $0x30] sm:$0xff]   ;;  %v63_v23 = vld [vmem:[%s5682_s5 + $0x60] sm:$0xff] }
   0xa   :  { %3913 = vmatmul.mubr.msk.bf16.vlgmr.msra.gmra.mrb[0].mxu0 %vm193_vm0, %v3982_v8  ;;  %v64_v22 = vld [vmem:[%s5682_s5 + $0x68] sm:$0xff]  ;;  %v66_v24 = vld [vmem:[%s5682_s5 + $0x78] sm:$0xff]  ;;  %v65_v25 = vld [vmem:[%s5682_s5 + $0x70] sm:$0xff] }
   0xb   :  { %3916 = vmatprep.mubr.msk.bf16.mxu0 %vm193_vm0, %v3983_v9  ;;  %v3988_v26 = vld [vmem:[%s5678_s1 + $0x38] sm:$0xff]   ;;  %v388_v27 = vld [vmem:[%s5683_s6 + $0x88] sm:$0xff]  ;;  %v387_v28 = vld [vmem:[%s5683_s6 + $0x80] sm:$0xff] }
   0xc   :  { %v372_v29 = vld [vmem:[%s5683_s6 + $0x8] sm:$0xff]  ;;  %v371_v30 = vld [vmem:[%s5683_s6] sm:$0xff]  ;;  %v390_v31 = vld [vmem:[%s5683_s6 + $0x98] sm:$0xff] }
   0xd   :  { %94 = vperm.xlu1 %3979, %v56_v10   ;;  %89 = vperm.xlu0 %3978, %v55_v11   ;;  %v389_v32 = vld [vmem:[%s5683_s6 + $0x90] sm:$0xff]  ;;  %v374_v33 = vld [vmem:[%s5683_s6 + $0x18] sm:$0xff]  ;;  %v392_v35 = vld [vmem:[%s5683_s6 + $0xa8] sm:$0xff] }
   0xe   :  { %v373_v34 = vld [vmem:[%s5683_s6 + $0x10] sm:$0xff]  ;;  %v391_v36 = vld [vmem:[%s5683_s6 + $0xa0] sm:$0xff]  ;;  %v376_v37 = vld [vmem:[%s5683_s6 + $0x28] sm:$0xff] }
   0xf   :  { %v375_v38 = vld [vmem:[%s5683_s6 + $0x20] sm:$0xff]  ;;  %v394_v39 = vld [vmem:[%s5683_s6 + $0xb8] sm:$0xff]  ;;  %v393_v40 = vld [vmem:[%s5683_s6 + $0xb0] sm:$0xff] }
  0x10   :  { %v378_v41 = vld [vmem:[%s5683_s6 + $0x38] sm:$0xff]  ;;  %v377_v42 = vld [vmem:[%s5683_s6 + $0x30] sm:$0xff]  ;;  %v396_v43 = vld [vmem:[%s5683_s6 + $0xc8] sm:$0xff] }
  0x11   :  { %104 = vperm.xlu1 %3979, %v58_v12   ;;  %99 = vperm.xlu0 %3978, %v57_v13   ;;  %v395_v44 = vld [vmem:[%s5683_s6 + $0xc0] sm:$0xff]  ;;  %v380_v45 = vld [vmem:[%s5683_s6 + $0x48] sm:$0xff]  ;;  %v398_v47 = vld [vmem:[%s5683_s6 + $0xd8] sm:$0xff] }
  0x12   :  { %3917 = vmatmul.mubr.msk.bf16.gmra.mrb[4].mxu0 %vm193_vm0, %v3984_v14  ;;  %v379_v46 = vld [vmem:[%s5683_s6 + $0x40] sm:$0xff]  ;;  %v397_v48 = vld [vmem:[%s5683_s6 + $0xd0] sm:$0xff]  ;;  %v382_v49 = vld [vmem:[%s5683_s6 + $0x58] sm:$0xff] }
  0x13   :  { %3920 = vmatprep.mubr.msk.bf16.mxu0 %vm193_vm0, %v3985_v15  ;;  %v381_v50 = vld [vmem:[%s5683_s6 + $0x50] sm:$0xff]  ;;  %v400_v51 = vld [vmem:[%s5683_s6 + $0xe8] sm:$0xff]  ;;  %v399_v52 = vld [vmem:[%s5683_s6 + $0xe0] sm:$0xff] }
  0x14   :  { %v384_v53 = vld [vmem:[%s5683_s6 + $0x68] sm:$0xff]  ;;  %v383_v54 = vld [vmem:[%s5683_s6 + $0x60] sm:$0xff]  ;;  %v402_v55 = vld [vmem:[%s5683_s6 + $0xf8] sm:$0xff] }
  0x15   :  { %114 = vperm.xlu1 %3979, %v60_v16   ;;  %109 = vperm.xlu0 %3978, %v59_v17   ;;  %v401_v56 = vld [vmem:[%s5683_s6 + $0xf0] sm:$0xff]  ;;  %v386_v57 = vld [vmem:[%s5683_s6 + $0x78] sm:$0xff] }
  0x16   :  { %v385_v58 = vld [vmem:[%s5683_s6 + $0x70] sm:$0xff] }
  0x19   :  { %124 = vperm.xlu1 %3979, %v62_v18   ;;  %119 = vperm.xlu0 %3978, %v61_v19  }
  0x1a   :  { %3921 = vmatmul.mubr.msk.bf16.gmra.mrb[8].mxu0 %vm193_vm0, %v3986_v20 }
  0x1b   :  { %3924 = vmatprep.mubr.msk.bf16.mxu0 %vm193_vm0, %v3987_v21 }
  0x1d   :  { %134 = vperm.xlu1 %3979, %v64_v22   ;;  %129 = vperm.xlu0 %3978, %v63_v23  }
  0x21   :  { %144 = vperm.xlu1 %3979, %v66_v24   ;;  %139 = vperm.xlu0 %3978, %v65_v25  }
  0x22   :  { %3925 = vmatmul.mubr.msk.bf16.gmra.mrb[12].mxu0 %vm193_vm0, %v3988_v26 }
  0x25   :  { %490 = vperm.xlu1 %3979, %v388_v27   ;;  %485 = vperm.xlu0 %3978, %v387_v28  }
  0x29   :  { %410 = vperm.xlu1 %3979, %v372_v29   ;;  %405 = vperm.xlu0 %3978, %v371_v30  }
  0x2d   :  { %500 = vperm.xlu1 %3979, %v390_v31   ;;  %495 = vperm.xlu0 %3978, %v389_v32  }
  0x31   :  { %420 = vperm.xlu1 %3979, %v374_v33   ;;  %415 = vperm.xlu0 %3978, %v373_v34  }
  0x35   :  { %510 = vperm.xlu1 %3979, %v392_v35   ;;  %505 = vperm.xlu0 %3978, %v391_v36  }
  0x39   :  { %430 = vperm.xlu1 %3979, %v376_v37   ;;  %425 = vperm.xlu0 %3978, %v375_v38  }
  0x3d   :  { %520 = vperm.xlu1 %3979, %v394_v39   ;;  %515 = vperm.xlu0 %3978, %v393_v40  }
  0x41   :  { %440 = vperm.xlu1 %3979, %v378_v41   ;;  %435 = vperm.xlu0 %3978, %v377_v42  }
  0x45   :  { %530 = vperm.xlu1 %3979, %v396_v43   ;;  %525 = vperm.xlu0 %3978, %v395_v44  }
  0x49   :  { %450 = vperm.xlu1 %3979, %v380_v45   ;;  %445 = vperm.xlu0 %3978, %v379_v46  }
  0x4d   :  { %540 = vperm.xlu1 %3979, %v398_v47   ;;  %535 = vperm.xlu0 %3978, %v397_v48  }
  0x51   :  { %460 = vperm.xlu1 %3979, %v382_v49   ;;  %455 = vperm.xlu0 %3978, %v381_v50  }
  0x55   :  { %550 = vperm.xlu1 %3979, %v400_v51   ;;  %545 = vperm.xlu0 %3978, %v399_v52  }
  0x59   :  { %470 = vperm.xlu1 %3979, %v384_v53   ;;  %465 = vperm.xlu0 %3978, %v383_v54  }
  0x5d   :  { %560 = vperm.xlu1 %3979, %v402_v55   ;;  %555 = vperm.xlu0 %3978, %v401_v56  }
  0x5e   :  { %15 = vsyncpa [#allocation4], 0  ;;  %v3189_v59 = vld [vmem:[%s5683_s6 + $0x188] sm:$0xff]  ;;  %v3188_v60 = vld [vmem:[%s5683_s6 + $0x180] sm:$0xff]  ;;  %vm3107_vm1 = vcmask 1040384   ;;  %vm3109_vm2 = vcmask 1041408  }
  0x5f   :  { %v3173_v61 = vld [vmem:[%s5683_s6 + $0x108] sm:$0xff]  ;;  %v3172_v62 = vld [vmem:[%s5683_s6 + $0x100] sm:$0xff]  ;;  %v3191_v63 = vld [vmem:[%s5683_s6 + $0x198] sm:$0xff]  ;;  %vm3111_vm3 = vcmask 1042432  }
  0x60   :  { %v3190_v0 = vld [vmem:[%s5683_s6 + $0x190] sm:$0xff]  ;;  %v3175_v1 = vld [vmem:[%s5683_s6 + $0x118] sm:$0xff]  ;;  %v3193_v3 = vld [vmem:[%s5683_s6 + $0x1a8] sm:$0xff] }
  0x61   :  { %480 = vperm.xlu1 %3979, %v386_v57   ;;  %475 = vperm.xlu0 %3978, %v385_v58   ;;  %v3174_v2 = vld [vmem:[%s5683_s6 + $0x110] sm:$0xff]  ;;  %v3192_v4 = vld [vmem:[%s5683_s6 + $0x1a0] sm:$0xff]  ;;  %v3177_v5 = vld [vmem:[%s5683_s6 + $0x128] sm:$0xff] }
  0x62   :  { %v3176_v6 = vld [vmem:[%s5683_s6 + $0x120] sm:$0xff]  ;;  %v3195_v7 = vld [vmem:[%s5683_s6 + $0x1b8] sm:$0xff]  ;;  %v3194_v8 = vld [vmem:[%s5683_s6 + $0x1b0] sm:$0xff] }
  0x63   :  { %v3179_v9 = vld [vmem:[%s5683_s6 + $0x138] sm:$0xff]  ;;  %v3178_v10 = vld [vmem:[%s5683_s6 + $0x130] sm:$0xff]  ;;  %v3197_v11 = vld [vmem:[%s5683_s6 + $0x1c8] sm:$0xff] }
  0x64   :  { %v3196_v12 = vld [vmem:[%s5683_s6 + $0x1c0] sm:$0xff]  ;;  %v3181_v16 = vld [vmem:[%s5683_s6 + $0x148] sm:$0xff]  ;;  %v3199_v20 = vld [vmem:[%s5683_s6 + $0x1d8] sm:$0xff] }
  0x65   :  { %1020 = vperm.xlu1 %3979, %v3189_v59   ;;  %1015 = vperm.xlu0 %3978, %v3188_v60   ;;  %v3989_v15 = vld [vmem:[%s5679_s2] sm:$0xff]   ;;  %v3198_v21 = vld [vmem:[%s5683_s6 + $0x1d0] sm:$0xff]  ;;  %v3183_v24 = vld [vmem:[%s5683_s6 + $0x158] sm:$0xff] }
  0x66   :  { %v3180_v17 = vld [vmem:[%s5683_s6 + $0x140] sm:$0xff]  ;;  %3944 = vmatprep.mubr.bf16.mxu1 %v3989_v15  ;;  %v3182_v25 = vld [vmem:[%s5683_s6 + $0x150] sm:$0xff]  ;;  %v3201_v28 = vld [vmem:[%s5683_s6 + $0x1e8] sm:$0xff] }
  0x67   :  { %v3200_v29 = vld [vmem:[%s5683_s6 + $0x1e0] sm:$0xff]  ;;  %v3185_v32 = vld [vmem:[%s5683_s6 + $0x168] sm:$0xff]  ;;  %v3203_v35 = vld [vmem:[%s5683_s6 + $0x1f8] sm:$0xff] }
  0x68   :  { %v3184_v33 = vld [vmem:[%s5683_s6 + $0x160] sm:$0xff]  ;;  %v3202_v36 = vld [vmem:[%s5683_s6 + $0x1f0] sm:$0xff]  ;;  %v3187_v38 = vld [vmem:[%s5683_s6 + $0x178] sm:$0xff] }
  0x69   :  { %940 = vperm.xlu1 %3979, %v3173_v61   ;;  %935 = vperm.xlu0 %3978, %v3172_v62   ;;  %v3186_v39 = vld [vmem:[%s5683_s6 + $0x170] sm:$0xff]  ;;  %v3285_v42 = vld [vmem:[%s5683_s6 + $0x288] sm:$0xff]  ;;  %v3284_v43 = vld [vmem:[%s5683_s6 + $0x280] sm:$0xff] }
  0x6a   :  { %v3269_v45 = vld [vmem:[%s5683_s6 + $0x208] sm:$0xff]  ;;  %v3268_v46 = vld [vmem:[%s5683_s6 + $0x200] sm:$0xff]  ;;  %v3287_v48 = vld [vmem:[%s5683_s6 + $0x298] sm:$0xff] }
  0x6b   :  { %v3286_v49 = vld [vmem:[%s5683_s6 + $0x290] sm:$0xff]  ;;  %v3271_v52 = vld [vmem:[%s5683_s6 + $0x218] sm:$0xff]  ;;  %v3289_v55 = vld [vmem:[%s5683_s6 + $0x2a8] sm:$0xff] }
  0x6c   :  { %v3270_v53 = vld [vmem:[%s5683_s6 + $0x210] sm:$0xff]  ;;  %v3288_v56 = vld [vmem:[%s5683_s6 + $0x2a0] sm:$0xff]  ;;  %v3273_v58 = vld [vmem:[%s5683_s6 + $0x228] sm:$0xff] }
  0x6d   :  { %1030 = vperm.xlu1 %3979, %v3191_v63   ;;  %1025 = vperm.xlu0 %3978, %v3190_v0   ;;  %v3272_v59 = vld [vmem:[%s5683_s6 + $0x220] sm:$0xff]  ;;  %v3291_v62 = vld [vmem:[%s5683_s6 + $0x2b8] sm:$0xff]  ;;  %v3290_v63 = vld [vmem:[%s5683_s6 + $0x2b0] sm:$0xff] }
  0x71   :  { %950 = vperm.xlu1 %3979, %v3175_v1   ;;  %945 = vperm.xlu0 %3978, %v3174_v2   ;;  %v3275_v1 = vld [vmem:[%s5683_s6 + $0x238] sm:$0xff]  ;;  %v3274_v2 = vld [vmem:[%s5683_s6 + $0x230] sm:$0xff] }
  0x75   :  { %1040 = vperm.xlu1 %3979, %v3193_v3   ;;  %1035 = vperm.xlu0 %3978, %v3192_v4   ;;  %v3293_v4 = vld [vmem:[%s5683_s6 + $0x2c8] sm:$0xff] }
  0x79   :  { %960 = vperm.xlu1 %3979, %v3177_v5   ;;  %955 = vperm.xlu0 %3978, %v3176_v6   ;;  %v3292_v5 = vld [vmem:[%s5683_s6 + $0x2c0] sm:$0xff] }
  0x7d   :  { %1050 = vperm.xlu1 %3979, %v3195_v7   ;;  %1045 = vperm.xlu0 %3978, %v3194_v8   ;;  %v3277_v8 = vld [vmem:[%s5683_s6 + $0x248] sm:$0xff] }
  0x81   :  { %970 = vperm.xlu1 %3979, %v3179_v9   ;;  %965 = vperm.xlu0 %3978, %v3178_v10   ;;  %v3276_v9 = vld [vmem:[%s5683_s6 + $0x240] sm:$0xff] }
  0x84   :  { %v4480_v13 = vpop.permute.xlu1 %79  ;;  %v4482_v14 = vpop.permute.xlu0 %69 }
  0x85   :  { %1060 = vperm.xlu1 %3979, %v3197_v11   ;;  %1055 = vperm.xlu0 %3978, %v3196_v12   ;;  %v3295_v11 = vld [vmem:[%s5683_s6 + $0x2d8] sm:$0xff]  ;;  %v3294_v12 = vld [vmem:[%s5683_s6 + $0x2d0] sm:$0xff] }
  0x88   :  { %v4493_v18 = vpop.permute.xlu1 %84  ;;  %v4495_v19 = vpop.permute.xlu0 %74 }
  0x89   :  { %980 = vperm.xlu1 %3979, %v3181_v16   ;;  %975 = vperm.xlu0 %3978, %v3180_v17   ;;  %v3279_v16 = vld [vmem:[%s5683_s6 + $0x258] sm:$0xff]  ;;  %v3278_v17 = vld [vmem:[%s5683_s6 + $0x250] sm:$0xff] }
  0x8c   :  { %v4503_v22 = vpop.permute.xlu1 %94  ;;  %v4505_v23 = vpop.permute.xlu0 %89 }
  0x8d   :  { %1070 = vperm.xlu1 %3979, %v3199_v20   ;;  %1065 = vperm.xlu0 %3978, %v3198_v21  }
  0x90   :  { %v4513_v26 = vpop.permute.xlu1 %104  ;;  %v4515_v27 = vpop.permute.xlu0 %99 }
  0x91   :  { %990 = vperm.xlu1 %3979, %v3183_v24   ;;  %985 = vperm.xlu0 %3978, %v3182_v25   ;;  %v3297_v24 = vld [vmem:[%s5683_s6 + $0x2e8] sm:$0xff]  ;;  %v3296_v25 = vld [vmem:[%s5683_s6 + $0x2e0] sm:$0xff] }
  0x94   :  { %v4523_v30 = vpop.permute.xlu0 %109  ;;  %v4525_v31 = vpop.permute.xlu1 %114 }
  0x95   :  { %1080 = vperm.xlu1 %3979, %v3201_v28   ;;  %1075 = vperm.xlu0 %3978, %v3200_v29   ;;  %v3281_v29 = vld [vmem:[%s5683_s6 + $0x268] sm:$0xff] }
  0x98   :  { %v4533_v34 = vpop.permute.xlu0 %119  ;;  %v4541_v37 = vpop.permute.xlu1 %124 }
  0x99   :  { %1000 = vperm.xlu1 %3979, %v3185_v32   ;;  %995 = vperm.xlu0 %3978, %v3184_v33   ;;  %v3280_v32 = vld [vmem:[%s5683_s6 + $0x260] sm:$0xff] }
  0x9c   :  { %v4549_v40 = vpop.permute.xlu0 %129  ;;  %v4551_v41 = vpop.permute.xlu1 %134 }
  0x9d   :  { %1090 = vperm.xlu1 %3979, %v3203_v35   ;;  %1085 = vperm.xlu0 %3978, %v3202_v36   ;;  %v3299_v35 = vld [vmem:[%s5683_s6 + $0x2f8] sm:$0xff]  ;;  %v3298_v36 = vld [vmem:[%s5683_s6 + $0x2f0] sm:$0xff] }
  0xa0   :  { %v4559_v44 = vpop.permute.xlu0 %139  ;;  %v4567_v47 = vpop.permute.xlu1 %144 }
  0xa1   :  { %1010 = vperm.xlu1 %3979, %v3187_v38   ;;  %1005 = vperm.xlu0 %3978, %v3186_v39  }
  0xa4   :  { %v4575_v50 = vpop.permute.xlu0 %485  ;;  %v4577_v51 = vpop.permute.xlu1 %490 }
  0xa5   :  { %1615 = vperm.xlu1 %3979, %v3285_v42   ;;  %1610 = vperm.xlu0 %3978, %v3284_v43  }
  0xa8   :  { %v4585_v54 = vpop.permute.xlu0 %405  ;;  %v4593_v57 = vpop.permute.xlu1 %410 }
  0xa9   :  { %1535 = vperm.xlu1 %3979, %v3269_v45   ;;  %1530 = vperm.xlu0 %3978, %v3268_v46   ;;  %v3283_v46 = vld [vmem:[%s5683_s6 + $0x278] sm:$0xff] }
  0xac   :  { %v4601_v60 = vpop.permute.xlu0 %495  ;;  %v4603_v61 = vpop.permute.xlu1 %500 }
  0xad   :  { %1625 = vperm.xlu1 %3979, %v3287_v48   ;;  %1620 = vperm.xlu0 %3978, %v3286_v49   ;;  %v3282_v48 = vld [vmem:[%s5683_s6 + $0x270] sm:$0xff] }
  0xb0   :  { %v4611_v0 = vpop.permute.xlu0 %415  ;;  %v4619_v3 = vpop.permute.xlu1 %420 }
  0xb1   :  { %1545 = vperm.xlu1 %3979, %v3271_v52   ;;  %1540 = vperm.xlu0 %3978, %v3270_v53  }
  0xb4   :  { %v4627_v6 = vpop.permute.xlu0 %505  ;;  %v4629_v7 = vpop.permute.xlu1 %510 }
  0xb5   :  { %1635 = vperm.xlu1 %3979, %v3289_v55   ;;  %1630 = vperm.xlu0 %3978, %v3288_v56  }
  0xb8   :  { %v4637_v10 = vpop.permute.xlu0 %425  ;;  %v4645_v15 = vpop.permute.xlu1 %430 }
  0xb9   :  { %1555 = vperm.xlu1 %3979, %v3273_v58   ;;  %1550 = vperm.xlu0 %3978, %v3272_v59  }
  0xbc   :  { %v4653_v20 = vpop.permute.xlu0 %515  ;;  %v4655_v21 = vpop.permute.xlu1 %520 }
  0xbd   :  { %1645 = vperm.xlu1 %3979, %v3291_v62   ;;  %1640 = vperm.xlu0 %3978, %v3290_v63   ;;  %v3381_v62 = vld [vmem:[%s5683_s6 + $0x388] sm:$0xff]  ;;  %v3380_v63 = vld [vmem:[%s5683_s6 + $0x380] sm:$0xff] }
  0xc0   :  { %v4663_v28 = vpop.permute.xlu0 %435  ;;  %v4671_v33 = vpop.permute.xlu1 %440 }
  0xc1   :  { %1565 = vperm.xlu1 %3979, %v3275_v1   ;;  %1560 = vperm.xlu0 %3978, %v3274_v2  }
  0xc4   :  { %v4679_v38 = vpop.permute.xlu0 %525  ;;  %v4681_v39 = vpop.permute.xlu1 %530 }
  0xc5   :  { %1655 = vperm.xlu1 %3979, %v3293_v4   ;;  %1650 = vperm.xlu0 %3978, %v3292_v5  }
  0xc8   :  { %v4692_v56 = vpop.permute.xlu0 %445 }
  0xc9   :  { %1575 = vperm.xlu1 %3979, %v3277_v8   ;;  %1570 = vperm.xlu0 %3978, %v3276_v9   ;;  %v3365_v9 = vld [vmem:[%s5683_s6 + $0x308] sm:$0xff] }
  0xcd   :  { %1665 = vperm.xlu1 %3979, %v3295_v11   ;;  %1660 = vperm.xlu0 %3978, %v3294_v12   ;;  %v3364_v12 = vld [vmem:[%s5683_s6 + $0x300] sm:$0xff] }
  0xd1   :  { %1585 = vperm.xlu1 %3979, %v3279_v16   ;;  %1580 = vperm.xlu0 %3978, %v3278_v17   ;;  %v4710_v16 = vpop.permute.xlu0 %535 }
  0xd5   :  { %1675 = vperm.xlu1 %3979, %v3297_v24   ;;  %1670 = vperm.xlu0 %3978, %v3296_v25  }
  0xd9   :  { %1595 = vperm.xlu1 %3979, %v3281_v29   ;;  %1590 = vperm.xlu0 %3978, %v3280_v32  }
  0xdd   :  { %1685 = vperm.xlu1 %3979, %v3299_v35   ;;  %1680 = vperm.xlu0 %3978, %v3298_v36   ;;  %v3914_v42 = vpop.f32.mrb[0].mxu0  ;;  %v3383_v36 = vld [vmem:[%s5683_s6 + $0x398] sm:$0xff] }
  0xde   :  { %v261_v43 = vadd.f32 %v3914_v42, %v4480_v13  ;;  %v252_v45 = vpop.f32.mrb[1].mxu0 }
  0xdf   :  { %v3915_v49 = vpop.f32.mrb[2].mxu0  ;;  %v253_v52 = vadd.f32 %v252_v45, %v4482_v14  ;;  %v4701_v14 = vpop.permute.xlu1 %450 }
  0xe0   :  { %v264_v53 = vadd.f32 %v3915_v49, %v4493_v18  ;;  %v255_v55 = vpop.f32.mrb[3].mxu0  ;;  %v317_v13 = vmax.f32 %v261_v43, 0.0 }
  0xe1   :  { %1605 = vperm.xlu1 %3979, %v3283_v46   ;;  %1600 = vperm.xlu0 %3978, %v3282_v48   ;;  %v256_v59 = vadd.f32 %v255_v55, %v4495_v19  ;;  %v315_v18 = vmax.f32 %v253_v52, 0.0  ;;  %v4723_v46 = vpop.permute.xlu0 %455  ;;  %v3367_v52 = vld [vmem:[%s5683_s6 + $0x318] sm:$0xff] }
  0xe2   :  { %v318_v58 = vmax.f32 %v264_v53, 0.0 }
  0xe3   :  { %v316_v2 = vmax.f32 %v256_v59, 0.0  ;;  %v4714_v25 = vpop.permute.xlu1 %540 }
  0xe4   :  { %v332_v1 = vpack.c.bf16 %v318_v58, %v317_v13  ;;  %v3366_v13 = vld [vmem:[%s5683_s6 + $0x310] sm:$0xff] }
  0xe5   :  { %2210 = vperm.xlu1 %3979, %v3381_v62   ;;  %2205 = vperm.xlu0 %3978, %v3380_v63   ;;  %v3918_v4 = vpop.f32.mrb[4].mxu0  ;;  %v331_v19 = vpack.c.bf16 %v316_v2, %v315_v18  ;;  %v4743_v2 = vpop.permute.xlu0 %545 }
  0xe6   :  { %v277_v5 = vadd.f32 %v3918_v4, %v4515_v27  ;;  %v268_v8 = vpop.f32.mrb[5].mxu0 }
  0xe7   :  { %v3919_v11 = vpop.f32.mrb[6].mxu0  ;;  %v269_v17 = vadd.f32 %v268_v8, %v4505_v23  ;;  %3928 = vmatprep.subr.bf16.mxu1 %v331_v19  ;;  %v3382_v23 = vld [vmem:[%s5683_s6 + $0x390] sm:$0xff]  ;;  %v4729_v53 = vpop.permute.xlu1 %460 }
  0xe8   :  { %v280_v24 = vadd.f32 %v3919_v11, %v4513_v26  ;;  %v271_v27 = vpop.f32.mrb[7].mxu0  ;;  %3929 = vmatpush3.bf16.msra.mxu1 %v331_v19  ;;  %v321_v29 = vmax.f32 %v277_v5, 0.0 }
  0xe9   :  { %2130 = vperm.xlu1 %3979, %v3365_v9   ;;  %v272_v35 = vadd.f32 %v271_v27, %v4503_v22  ;;  %2125 = vperm.xlu0 %3978, %v3364_v12   ;;  %v319_v26 = vmax.f32 %v269_v17, 0.0  ;;  %v3369_v12 = vld [vmem:[%s5683_s6 + $0x328] sm:$0xff] }
  0xea   :  { %v322_v32 = vmax.f32 %v280_v24, 0.0  ;;  %3930 = vmatprep.subr.bf16.mxu1 %v332_v1  ;;  %v3368_v24 = vld [vmem:[%s5683_s6 + $0x320] sm:$0xff] }
  0xeb   :  { %v320_v43 = vmax.f32 %v272_v35, 0.0  ;;  %v4745_v8 = vpop.permute.xlu1 %550  ;;  %v4756_v35 = vpop.permute.xlu0 %465 }
  0xec   :  { %v334_v42 = vpack.c.bf16 %v322_v32, %v321_v29  ;;  %3931 = vmatpush3.bf16.msra.mxu1 %v332_v1  ;;  %v3385_v1 = vld [vmem:[%s5683_s6 + $0x3a8] sm:$0xff] }
  0xed   :  { %2220 = vperm.xlu1 %3979, %v3383_v36   ;;  %v3922_v45 = vpop.f32.mrb[8].mxu0  ;;  %v333_v48 = vpack.c.bf16 %v320_v43, %v319_v26  ;;  %2215 = vperm.xlu0 %3978, %v3382_v23   ;;  %v3387_v26 = vld [vmem:[%s5683_s6 + $0x3b8] sm:$0xff] }
  0xee   :  { %v293_v22 = vadd.f32 %v3922_v45, %v4533_v34  ;;  %v284_v49 = vpop.f32.mrb[9].mxu0 }
  0xef   :  { %v3923_v55 = vpop.f32.mrb[10].mxu0  ;;  %v285_v58 = vadd.f32 %v284_v49, %v4523_v30  ;;  %3932 = vmatprep.subr.bf16.mxu1 %v333_v48  ;;  %v3384_v30 = vld [vmem:[%s5683_s6 + $0x3a0] sm:$0xff]  ;;  %v4773_v49 = vpop.permute.xlu0 %555 }
  0xf0   :  { %v296_v59 = vadd.f32 %v3923_v55, %v4541_v37  ;;  %v287_v62 = vpop.f32.mrb[11].mxu0  ;;  %3933 = vmatpush3.bf16.msra.mxu1 %v333_v48  ;;  %v325_v34 = vmax.f32 %v293_v22, 0.0  ;;  %v3370_v22 = vld [vmem:[%s5683_s6 + $0x330] sm:$0xff]  ;;  %v3389_v55 = vld [vmem:[%s5683_s6 + $0x3c8] sm:$0xff] }
  0xf1   :  { %2140 = vperm.xlu1 %3979, %v3367_v52   ;;  %v288_v18 = vadd.f32 %v287_v62, %v4525_v31  ;;  %2135 = vperm.xlu0 %3978, %v3366_v13   ;;  %v323_v37 = vmax.f32 %v285_v58, 0.0  ;;  %v3388_v13 = vld [vmem:[%s5683_s6 + $0x3c0] sm:$0xff]  ;;  %v3990_v58 = vld [vmem:[%s5679_s2 + $0x8] sm:$0xff]  }
  0xf2   :  { %v326_v63 = vmax.f32 %v296_v59, 0.0  ;;  %3934 = vmatprep.subr.bf16.mxu1 %v334_v42  ;;  %v3991_v59 = vld [vmem:[%s5679_s2 + $0x10] sm:$0xff]  }
  0xf3   :  { %v324_v5 = vmax.f32 %v288_v18, 0.0  ;;  %v4789_v62 = vpop.permute.xlu0 %475  ;;  %v3372_v18 = vld [vmem:[%s5683_s6 + $0x340] sm:$0xff] }
  0xf4   :  { %v336_v4 = vpack.c.bf16 %v326_v63, %v325_v34  ;;  %3935 = vmatpush3.bf16.msra.mxu1 %v334_v42  ;;  %v4762_v42 = vpop.permute.xlu1 %470  ;;  %v3373_v34 = vld [vmem:[%s5683_s6 + $0x348] sm:$0xff] }
  0xf5   :  { %2230 = vperm.xlu1 %3979, %v3385_v1   ;;  %v3926_v31 = vpop.f32.mrb[12].mxu0  ;;  %v335_v19 = vpack.c.bf16 %v324_v5, %v323_v37  ;;  %2225 = vperm.xlu0 %3978, %v3384_v30   ;;  %v3391_v1 = vld [vmem:[%s5683_s6 + $0x3d8] sm:$0xff]  ;;  %v3390_v30 = vld [vmem:[%s5683_s6 + $0x3d0] sm:$0xff] }
  0xf6   :  { %v309_v9 = vadd.f32 %v3926_v31, %v4559_v44  ;;  %v300_v11 = vpop.f32.mrb[13].mxu0  ;;  %v3993_v31 = vld [vmem:[%s5679_s2 + $0x20] sm:$0xff]  }
  0xf7   :  { %v3927_v17 = vpop.f32.mrb[14].mxu0  ;;  %v301_v27 = vadd.f32 %v300_v11, %v4549_v40  ;;  %3936 = vmatprep.subr.bf16.mxu1 %v335_v19  ;;  %v3386_v40 = vld [vmem:[%s5683_s6 + $0x3b0] sm:$0xff]  ;;  %v4805_v37 = vpop.permute.xlu0 %1015 }
  0xf8   :  { %v312_v29 = vadd.f32 %v3927_v17, %v4567_v47  ;;  %v303_v32 = vpop.f32.mrb[15].mxu0  ;;  %3937 = vmatpush3.bf16.msra.mxu1 %v335_v19  ;;  %v329_v44 = vmax.f32 %v309_v9, 0.0  ;;  %v4775_v52 = vpop.permute.xlu1 %560  ;;  %v3375_v19 = vld [vmem:[%s5683_s6 + $0x358] sm:$0xff]  ;;  %v3374_v9 = vld [vmem:[%s5683_s6 + $0x350] sm:$0xff] }
  0xf9   :  { %2150 = vperm.xlu1 %3979, %v3369_v12   ;;  %v304_v23 = vadd.f32 %v303_v32, %v4551_v41  ;;  %2145 = vperm.xlu0 %3978, %v3368_v24   ;;  %v327_v47 = vmax.f32 %v301_v27, 0.0  ;;  %v3371_v41 = vld [vmem:[%s5683_s6 + $0x338] sm:$0xff]  ;;  %v3393_v12 = vld [vmem:[%s5683_s6 + $0x3e8] sm:$0xff]  ;;  %v3392_v24 = vld [vmem:[%s5683_s6 + $0x3e0] sm:$0xff] }
  0xfa   :  { %v330_v36 = vmax.f32 %v312_v29, 0.0  ;;  %3938 = vmatprep.subr.bf16.mxu1 %v336_v4  ;;  %v3994_v27 = vld [vmem:[%s5679_s2 + $0x28] sm:$0xff]   ;;  %v3995_v29 = vld [vmem:[%s5679_s2 + $0x30] sm:$0xff]  }
  0xfb   :  { %v328_v45 = vmax.f32 %v304_v23, 0.0  ;;  %v4821_v11 = vpop.permute.xlu0 %935  ;;  %v3377_v32 = vld [vmem:[%s5683_s6 + $0x368] sm:$0xff] }
  0xfc   :  { %v338_v43 = vpack.c.bf16 %v330_v36, %v329_v44  ;;  %3939 = vmatpush3.bf16.msra.mxu1 %v336_v4  ;;  %v4794_v63 = vpop.permute.xlu1 %480  ;;  %v3992_v4 = vld [vmem:[%s5679_s2 + $0x18] sm:$0xff]   ;;  %v3376_v44 = vld [vmem:[%s5683_s6 + $0x360] sm:$0xff] }
  0xfd   :  { %2240 = vperm.xlu1 %3979, %v3387_v26   ;;  %v337_v48 = vpack.c.bf16 %v328_v45, %v327_v47  ;;  %2235 = vperm.xlu0 %3978, %v3386_v40   ;;  %v3395_v26 = vld [vmem:[%s5683_s6 + $0x3f8] sm:$0xff]  ;;  %v3394_v40 = vld [vmem:[%s5683_s6 + $0x3f0] sm:$0xff] }
  0xfe   :  { %v3996_v47 = vld [vmem:[%s5679_s2 + $0x38] sm:$0xff]  }
  0xff   :  { %3940 = vmatprep.subr.bf16.mxu1 %v337_v48  ;;  %v4843_v36 = vpop.permute.xlu0 %1025 }
 0x100   :  { %3941 = vmatpush3.bf16.msra.mxu1 %v337_v48  ;;  %v4810_v5 = vpop.permute.xlu1 %1020  ;;  %5686 = vst [vmem:[#allocation6_spill] sm:$0xff] %v4843_v36  ;;  %v3379_v48 = vld [vmem:[%s5683_s6 + $0x378] sm:$0xff] }
 0x101   :  { %2160 = vperm.xlu1 %3979, %v3371_v41   ;;  %2155 = vperm.xlu0 %3978, %v3370_v22   ;;  %v3378_v22 = vld [vmem:[%s5683_s6 + $0x370] sm:$0xff] }
 0x102   :  { %3942 = vmatprep.subr.bf16.mxu1 %v338_v43 }
 0x103   :  { %v4859_v45 = vpop.permute.xlu0 %945 }
 0x104   :  { %3943 = vmatpush3.bf16.msra.mxu1 %v338_v43  ;;  %v4826_v17 = vpop.permute.xlu1 %940  ;;  %v3997_v43 = vld [vmem:[%s5679_s2 + $0x40] sm:$0xff]  }
 0x105   :  { %2250 = vperm.xlu1 %3979, %v3389_v55   ;;  %2245 = vperm.xlu0 %3978, %v3388_v13   ;;  %v3429_v55 = vld [vmem:[%s5682_s5 + $0x88] sm:$0xff]  ;;  %v3428_v13 = vld [vmem:[%s5682_s5 + $0x80] sm:$0xff] }
 0x107   :  { %3945 = vmatmul.mubr.bf16.vlgmr.msra.gmra.mrb[0].mxu1 %v3990_v58  ;;  %v4875_v58 = vpop.permute.xlu0 %1035 }
 0x108   :  { %3948 = vmatprep.mubr.bf16.mxu1 %v3991_v59  ;;  %v4845_v23 = vpop.permute.xlu1 %1030  ;;  %5688 = vst [vmem:[#allocation8_spill] sm:$0xff] %v4875_v58  ;;  %v3998_v59 = vld [vmem:[%s5679_s2 + $0x48] sm:$0xff]  }
 0x109   :  { %2170 = vperm.xlu1 %3979, %v3373_v34   ;;  %2165 = vperm.xlu0 %3978, %v3372_v18   ;;  %5687 = vst [vmem:[#allocation7_spill] sm:$0xff] %v4845_v23  ;;  %v3999_v18 = vld [vmem:[%s5679_s2 + $0x50] sm:$0xff]  }
 0x10c   :  { %v4864_v41 = vpop.permute.xlu1 %950 }
 0x10d   :  { %2260 = vperm.xlu1 %3979, %v3391_v1   ;;  %2255 = vperm.xlu0 %3978, %v3390_v30   ;;  %v3431_v1 = vld [vmem:[%s5682_s5 + $0x98] sm:$0xff]  ;;  %v3430_v30 = vld [vmem:[%s5682_s5 + $0x90] sm:$0xff] }
 0x10f   :  { %3949 = vmatmul.mubr.bf16.gmra.mrb[4].mxu1 %v3992_v4  ;;  %v4891_v4 = vpop.permute.xlu0 %955 }
 0x110   :  { %3952 = vmatprep.mubr.bf16.mxu1 %v3993_v31  ;;  %v4880_v34 = vpop.permute.xlu1 %1040  ;;  %v3433_v31 = vld [vmem:[%s5682_s5 + $0xa8] sm:$0xff] }
 0x111   :  { %2180 = vperm.xlu1 %3979, %v3375_v19   ;;  %2175 = vperm.xlu0 %3978, %v3374_v9   ;;  %5689 = vst [vmem:[#allocation9_spill] sm:$0xff] %v4880_v34  ;;  %v3432_v9 = vld [vmem:[%s5682_s5 + $0xa0] sm:$0xff] }
 0x114   :  { %v4896_v19 = vpop.permute.xlu1 %960 }
 0x115   :  { %2270 = vperm.xlu1 %3979, %v3393_v12   ;;  %2265 = vperm.xlu0 %3978, %v3392_v24   ;;  %v4000_v12 = vld [vmem:[%s5679_s2 + $0x58] sm:$0xff]   ;;  %v4001_v24 = vld [vmem:[%s5679_s2 + $0x60] sm:$0xff]  }
 0x117   :  { %3953 = vmatmul.mubr.bf16.gmra.mrb[8].mxu1 %v3994_v27  ;;  %v3435_v27 = vld [vmem:[%s5682_s5 + $0xb8] sm:$0xff] }
 0x118   :  { %3956 = vmatprep.mubr.bf16.mxu1 %v3995_v29  ;;  %v3434_v29 = vld [vmem:[%s5682_s5 + $0xb0] sm:$0xff] }
 0x119   :  { %2190 = vperm.xlu1 %3979, %v3377_v32   ;;  %2185 = vperm.xlu0 %3978, %v3376_v44   ;;  %v4913_v32 = vpop.permute.xlu0 %1045  ;;  %v4915_v44 = vpop.permute.xlu1 %1050 }
 0x11a   :  { %5690 = vst [vmem:[#allocation10_spill] sm:$0xff] %v4913_v32  ;;  %5691 = vst [vmem:[#allocation11_spill] sm:$0xff] %v4915_v44 }
 0x11d   :  { %2280 = vperm.xlu1 %3979, %v3395_v26   ;;  %2275 = vperm.xlu0 %3978, %v3394_v40   ;;  %v3437_v26 = vld [vmem:[%s5682_s5 + $0xc8] sm:$0xff]  ;;  %v3436_v40 = vld [vmem:[%s5682_s5 + $0xc0] sm:$0xff] }
 0x11f   :  { %3957 = vmatmul.mubr.bf16.gmra.mrb[12].mxu1 %v3996_v47  ;;  %v4002_v47 = vld [vmem:[%s5679_s2 + $0x68] sm:$0xff]  }
 0x120   :  { %3960 = vmatprep.mubr.bf16.mxu1 %v3997_v43  ;;  %v4003_v43 = vld [vmem:[%s5679_s2 + $0x70] sm:$0xff]  }
 0x121   :  { %2200 = vperm.xlu1 %3979, %v3379_v48   ;;  %2195 = vperm.xlu0 %3978, %v3378_v22   ;;  %v4929_v48 = vpop.permute.xlu0 %965  ;;  %v3441_v22 = vld [vmem:[%s5682_s5 + $0xe8] sm:$0xff] }
 0x125   :  { %2692 = vperm.xlu1 %3979, %v3429_v55   ;;  %2687 = vperm.xlu0 %3978, %v3428_v13   ;;  %v4934_v55 = vpop.permute.xlu1 %970  ;;  %v3440_v13 = vld [vmem:[%s5682_s5 + $0xe0] sm:$0xff] }
 0x127   :  { %3961 = vmatmul.mubr.bf16.gmra.mrb[16].mxu1 %v3998_v59  ;;  %v3442_v59 = vld [vmem:[%s5682_s5 + $0xf0] sm:$0xff] }
 0x128   :  { %3964 = vmatprep.mubr.bf16.mxu1 %v3999_v18  ;;  %v3438_v18 = vld [vmem:[%s5682_s5 + $0xd0] sm:$0xff] }
 0x129   :  { %2702 = vperm.xlu1 %3979, %v3431_v1   ;;  %2697 = vperm.xlu0 %3978, %v3430_v30   ;;  %v4945_v1 = vpop.permute.xlu0 %1055  ;;  %v4004_v30 = vld [vmem:[%s5679_s2 + $0x78] sm:$0xff]  }
 0x12a   :  { %5692 = vst [vmem:[#allocation12_spill] sm:$0xff] %v4945_v1 }
 0x12d   :  { %2712 = vperm.xlu1 %3979, %v3433_v31   ;;  %2707 = vperm.xlu0 %3978, %v3432_v9   ;;  %v4950_v31 = vpop.permute.xlu1 %1060  ;;  %v3461_v9 = vld [vmem:[%s5682_s5 + $0x108] sm:$0xff] }
 0x12e   :  { %5693 = vst [vmem:[#allocation13_spill] sm:$0xff] %v4950_v31 }
 0x12f   :  { %3965 = vmatmul.mubr.bf16.gmra.mrb[20].mxu1 %v4000_v12  ;;  %v3460_v12 = vld [vmem:[%s5682_s5 + $0x100] sm:$0xff] }
 0x130   :  { %3968 = vmatprep.mubr.bf16.mxu1 %v4001_v24  ;;  %v4958_v24 = vpop.permute.xlu0 %975 }
 0x131   :  { %2722 = vperm.xlu1 %3979, %v3435_v27   ;;  %2717 = vperm.xlu0 %3978, %v3434_v29   ;;  %v3465_v27 = vld [vmem:[%s5682_s5 + $0x128] sm:$0xff]  ;;  %v4963_v29 = vpop.permute.xlu1 %980 }
 0x135   :  { %2732 = vperm.xlu1 %3979, %v3437_v26   ;;  %2727 = vperm.xlu0 %3978, %v3436_v40   ;;  %v3464_v26 = vld [vmem:[%s5682_s5 + $0x120] sm:$0xff] }
 0x136   :  { %v3468_v40 = vld [vmem:[%s5682_s5 + $0x140] sm:$0xff] }
 0x137   :  { %3969 = vmatmul.mubr.bf16.gmra.mrb[24].mxu1 %v4002_v47  ;;  %v3439_v47 = vld [vmem:[%s5682_s5 + $0xd8] sm:$0xff] }
 0x138   :  { %3972 = vmatprep.mubr.bf16.mxu1 %v4003_v43  ;;  %v4974_v43 = vpop.permute.xlu0 %1065 }
 0x139   :  { %2752 = vperm.xlu1 %3979, %v3441_v22   ;;  %2747 = vperm.xlu0 %3978, %v3440_v13   ;;  %5694 = vst [vmem:[#allocation14_spill] sm:$0xff] %v4974_v43  ;;  %v4976_v22 = vpop.permute.xlu1 %1070  ;;  %v3443_v13 = vld [vmem:[%s5682_s5 + $0xf8] sm:$0xff] }
 0x13a   :  { %5695 = vst [vmem:[#allocation15_spill] sm:$0xff] %v4976_v22  ;;  %v3476_v22 = vld [vmem:[#allocation2] ss:$0 sm:$0xff] }
 0x13d   :  { %2757 = vperm.xlu1 %3979, %v3442_v59   ;;  %2737 = vperm.xlu0 %3978, %v3438_v18   ;;  %v3469_v59 = vld [vmem:[%s5682_s5 + $0x148] sm:$0xff]  ;;  %v4984_v18 = vpop.permute.xlu0 %985 }
 0x13f   :  { %3973 = vmatmul.mubr.bf16.gmra.mrb[28].mxu1 %v4004_v30  ;;  %v3466_v30 = vld [vmem:[%s5682_s5 + $0x130] sm:$0xff] }
 0x141   :  { %2982 = vperm.xlu1 %3979, %v3461_v9   ;;  %2977 = vperm.xlu0 %3978, %v3460_v12   ;;  %v4989_v9 = vpop.permute.xlu1 %990  ;;  %v3462_v12 = vld [vmem:[%s5682_s5 + $0x110] sm:$0xff] }
 0x145   :  { %3002 = vperm.xlu1 %3979, %v3465_v27   ;;  %2997 = vperm.xlu0 %3978, %v3464_v26   ;;  %v3473_v27 = vld [vmem:[%s5682_s5 + $0x168] sm:$0xff]  ;;  %v3472_v26 = vld [vmem:[%s5682_s5 + $0x160] sm:$0xff] }
 0x149   :  { %3017 = vperm.xlu1 %3979, %v3468_v40   ;;  %2742 = vperm.xlu0 %3978, %v3439_v47   ;;  %v5000_v40 = vpop.permute.xlu0 %1075  ;;  %v5002_v47 = vpop.permute.xlu1 %1080 }
 0x14a   :  { %5696 = vst [vmem:[#allocation16_spill] sm:$0xff] %v5000_v40  ;;  %5697 = vst [vmem:[#allocation17_spill] sm:$0xff] %v5002_v47 }
 0x14d   :  { %2762 = vperm.xlu1 %3979, %v3443_v13   ;;  %3022 = vperm.xlu0 %3978, %v3469_v59   ;;  %v3463_v13 = vld [vmem:[%s5682_s5 + $0x118] sm:$0xff]  ;;  %v3470_v59 = vld [vmem:[%s5682_s5 + $0x150] sm:$0xff]  ;;  %v5015_v40 = vpop.permute.xlu1 %1000 }
 0x151   :  { %3007 = vperm.xlu1 %3979, %v3466_v30   ;;  %2987 = vperm.xlu0 %3978, %v3462_v12   ;;  %v5010_v30 = vpop.permute.xlu0 %995  ;;  %v3474_v12 = vld [vmem:[%s5682_s5 + $0x170] sm:$0xff]  ;;  %v5028_v47 = vpop.permute.xlu1 %1090 }
 0x152   :  { %5699 = vst [vmem:[#allocation19_spill] sm:$0xff] %v5028_v47 }
 0x155   :  { %3042 = vperm.xlu1 %3979, %v3473_v27   ;;  %3037 = vperm.xlu0 %3978, %v3472_v26   ;;  %v3467_v27 = vld [vmem:[%s5682_s5 + $0x138] sm:$0xff] }
 0x156   :  { %v3475_v26 = vld [vmem:[%s5682_s5 + $0x178] sm:$0xff] }
 0x159   :  { %2992 = vperm.xlu1 %3979, %v3463_v13   ;;  %3027 = vperm.xlu0 %3978, %v3470_v59   ;;  %v3471_v13 = vld [vmem:[%s5682_s5 + $0x158] sm:$0xff]  ;;  %v5026_v59 = vpop.permute.xlu0 %1085 }
 0x15a   :  { %5698 = vst [vmem:[#allocation18_spill] sm:$0xff] %v5026_v59 }
 0x15d   :  { %3047 = vperm.xlu1 %3979, %v3474_v12   ;;  %3012 = vperm.xlu0 %3978, %v3467_v27   ;;  %v5030_v43 = vpop.permute.xlu0 %1005  ;;  %v4007_v12 = vld [vmem:[%s5680_s3 + $0x4] ss:$8 sps:$4 sm:$0xff]  }
 0x15e   :  { %1285 = vmatprep.mubr.bf16.mxu0 %v4007_v12 }
 0x161   :  { %3052 = vperm.xlu1 %3979, %v3475_v26   ;;  %3032 = vperm.xlu0 %3978, %v3471_v13  }
 0x165   :  { %3120 = vperm.xlu0 %3978, %v3476_v22  }
 0x1da   :  { %v3946_v27 = vpop.f32.mrb[0].mxu1 }
 0x1db   :  { %v702_v31 = vadd.f32 %v3946_v27, %v4611_v0  ;;  %v693_v1 = vpop.f32.mrb[1].mxu1 }
 0x1dc   :  { %v694_v44 = vadd.f32 %v693_v1, %v4585_v54  ;;  %v3947_v59 = vpop.f32.mrb[2].mxu1 }
 0x1dd   :  { %v705_v47 = vadd.f32 %v3947_v59, %v4619_v3  ;;  %v696_v26 = vpop.f32.mrb[3].mxu1  ;;  %v822_v32 = vmax.f32 %v702_v31, 0.0 }
 0x1de   :  { %v697_v13 = vadd.f32 %v696_v26, %v4593_v57  ;;  %v820_v22 = vmax.f32 %v694_v44, 0.0 }
 0x1df   :  { %v823_v34 = vmax.f32 %v705_v47, 0.0 }
 0x1e0   :  { %v821_v58 = vmax.f32 %v697_v13, 0.0 }
 0x1e1   :  { %v5039_v23 = vpack.c.bf16 %v823_v34, %v822_v32 }
 0x1e2   :  { %v5041_v36 = vpack.c.bf16 %v821_v58, %v820_v22  ;;  %v3950_v12 = vpop.f32.mrb[4].mxu1 }
 0x1e3   :  { %v718_v0 = vadd.f32 %v3950_v12, %v4663_v28  ;;  %v709_v27 = vpop.f32.mrb[5].mxu1 }
 0x1e4   :  { %v710_v54 = vadd.f32 %v709_v27, %v4637_v10  ;;  %v3951_v1 = vpop.f32.mrb[6].mxu1 }
 0x1e5   :  { %v721_v3 = vadd.f32 %v3951_v1, %v4671_v33  ;;  %v712_v59 = vpop.f32.mrb[7].mxu1  ;;  %v826_v31 = vmax.f32 %v718_v0, 0.0 }
 0x1e6   :  { %v713_v57 = vadd.f32 %v712_v59, %v4645_v15  ;;  %v824_v44 = vmax.f32 %v710_v54, 0.0 }
 0x1e7   :  { %v827_v47 = vmax.f32 %v721_v3, 0.0 }
 0x1e8   :  { %v825_v26 = vmax.f32 %v713_v57, 0.0 }
 0x1e9   :  { %v5047_v34 = vpack.c.bf16 %v827_v47, %v826_v31 }
 0x1ea   :  { %v5049_v58 = vpack.c.bf16 %v825_v26, %v824_v44  ;;  %v3954_v32 = vpop.f32.mrb[8].mxu1 }
 0x1eb   :  { %v734_v28 = vadd.f32 %v3954_v32, %v4723_v46  ;;  %v725_v13 = vpop.f32.mrb[9].mxu1 }
 0x1ec   :  { %v726_v10 = vadd.f32 %v725_v13, %v4692_v56  ;;  %v3955_v22 = vpop.f32.mrb[10].mxu1 }
 0x1ed   :  { %v737_v33 = vadd.f32 %v3955_v22, %v4729_v53  ;;  %v728_v12 = vpop.f32.mrb[11].mxu1  ;;  %v830_v0 = vmax.f32 %v734_v28, 0.0 }
 0x1ee   :  { %v729_v15 = vadd.f32 %v728_v12, %v4701_v14  ;;  %v828_v54 = vmax.f32 %v726_v10, 0.0 }
 0x1ef   :  { %v831_v27 = vmax.f32 %v737_v33, 0.0 }
 0x1f0   :  { %v829_v1 = vmax.f32 %v729_v15, 0.0 }
 0x1f1   :  { %v5055_v3 = vpack.c.bf16 %v831_v27, %v830_v0 }
 0x1f2   :  { %v5057_v59 = vpack.c.bf16 %v829_v1, %v828_v54  ;;  %v3958_v57 = vpop.f32.mrb[12].mxu1 }
 0x1f3   :  { %v750_v46 = vadd.f32 %v3958_v57, %v4789_v62  ;;  %v741_v31 = vpop.f32.mrb[13].mxu1 }
 0x1f4   :  { %v742_v56 = vadd.f32 %v741_v31, %v4756_v35  ;;  %v3959_v47 = vpop.f32.mrb[14].mxu1 }
 0x1f5   :  { %v753_v53 = vadd.f32 %v3959_v47, %v4794_v63  ;;  %v744_v44 = vpop.f32.mrb[15].mxu1  ;;  %v834_v26 = vmax.f32 %v750_v46, 0.0 }
 0x1f6   :  { %v745_v14 = vadd.f32 %v744_v44, %v4762_v42  ;;  %v832_v28 = vmax.f32 %v742_v56, 0.0 }
 0x1f7   :  { %v835_v32 = vmax.f32 %v753_v53, 0.0 }
 0x1f8   :  { %v833_v13 = vmax.f32 %v745_v14, 0.0 }
 0x1f9   :  { %v5063_v10 = vpack.c.bf16 %v835_v32, %v834_v26 }
 0x1fa   :  { %v5065_v22 = vpack.c.bf16 %v833_v13, %v832_v28  ;;  %v3962_v33 = vpop.f32.mrb[16].mxu1 }
 0x1fb   :  { %v766_v62 = vadd.f32 %v3962_v33, %v4601_v60  ;;  %v757_v12 = vpop.f32.mrb[17].mxu1 }
 0x1fc   :  { %v758_v35 = vadd.f32 %v757_v12, %v4575_v50  ;;  %v3963_v15 = vpop.f32.mrb[18].mxu1 }
 0x1fd   :  { %v769_v63 = vadd.f32 %v3963_v15, %v4603_v61  ;;  %v760_v0 = vpop.f32.mrb[19].mxu1  ;;  %v838_v27 = vmax.f32 %v766_v62, 0.0 }
 0x1fe   :  { %v761_v42 = vadd.f32 %v760_v0, %v4577_v51  ;;  %v836_v1 = vmax.f32 %v758_v35, 0.0 }
 0x1ff   :  { %v839_v54 = vmax.f32 %v769_v63, 0.0 }
 0x200   :  { %v837_v57 = vmax.f32 %v761_v42, 0.0 }
 0x201   :  { %v861_v46 = vpack.c.bf16 %v839_v54, %v838_v27 }
 0x202   :  { %v860_v31 = vpack.c.bf16 %v837_v57, %v836_v1  ;;  %v3966_v56 = vpop.f32.mrb[20].mxu1 }
 0x203   :  { %v782_v47 = vadd.f32 %v3966_v56, %v4653_v20  ;;  %v773_v53 = vpop.f32.mrb[21].mxu1 }
 0x204   :  { %v774_v60 = vadd.f32 %v773_v53, %v4627_v6  ;;  %v3967_v44 = vpop.f32.mrb[22].mxu1  ;;  %3510 = vmatprep.subr.bf16.mxu0 %v860_v31  ;;  %v4017_v53 = vld [vmem:[%s5680_s3 + $0x44] ss:$8 sps:$4 sm:$0xff]  }
 0x205   :  { %v785_v50 = vadd.f32 %v3967_v44, %v4655_v21  ;;  %v776_v61 = vpop.f32.mrb[23].mxu1  ;;  %3511 = vmatpush3.bf16.msra.mxu0 %v5041_v36  ;;  %v842_v14 = vmax.f32 %v782_v47, 0.0  ;;  %v4020_v44 = vld [vmem:[%s5680_s3 + $0x54] ss:$8 sps:$4 sm:$0xff]  }
 0x206   :  { %v777_v51 = vadd.f32 %v776_v61, %v4629_v7  ;;  %3512 = vmatprep.subr.bf16.mxu0 %v861_v46  ;;  %v840_v32 = vmax.f32 %v774_v60, 0.0  ;;  %v4019_v60 = vld [vmem:[%s5680_s3 + $0x40] ss:$8 sps:$4 sm:$0xff]   ;;  %v4023_v61 = vld [vmem:[%s5680_s3 + $0x64] ss:$8 sps:$4 sm:$0xff]  }
 0x207   :  { %v843_v26 = vmax.f32 %v785_v50, 0.0  ;;  %v4022_v50 = vld [vmem:[%s5680_s3 + $0x50] ss:$8 sps:$4 sm:$0xff]  }
 0x208   :  { %v841_v28 = vmax.f32 %v777_v51, 0.0  ;;  %v4025_v51 = vld [vmem:[%s5680_s3 + $0x60] ss:$8 sps:$4 sm:$0xff]  }
 0x209   :  { %v863_v13 = vpack.c.bf16 %v843_v26, %v842_v14  ;;  %3513 = vmatpush3.bf16.msra.mxu0 %v5039_v23  ;;  %v4026_v14 = vld [vmem:[%s5680_s3 + $0x74] ss:$8 sps:$4 sm:$0xff]   ;;  %v4028_v26 = vld [vmem:[%s5680_s3 + $0x70] ss:$8 sps:$4 sm:$0xff]  }
 0x20a   :  { %v862_v20 = vpack.c.bf16 %v841_v28, %v840_v32  ;;  %v3970_v33 = vpop.f32.mrb[24].mxu1  ;;  %v4029_v32 = vld [vmem:[%s5680_s3 + $0x84] ss:$8 sps:$4 sm:$0xff]   ;;  %v4031_v28 = vld [vmem:[%s5680_s3 + $0x80] ss:$8 sps:$4 sm:$0xff]  }
 0x20b   :  { %v798_v6 = vadd.f32 %v3970_v33, %v4710_v16  ;;  %v789_v62 = vpop.f32.mrb[25].mxu1  ;;  %v4035_v33 = vld [vmem:[%s5680_s3 + $0xa4] ss:$8 sps:$4 sm:$0xff]  }
 0x20c   :  { %v790_v21 = vadd.f32 %v789_v62, %v4679_v38  ;;  %v3971_v12 = vpop.f32.mrb[26].mxu1  ;;  %3514 = vmatprep.subr.bf16.mxu0 %v862_v20  ;;  %v4034_v20 = vld [vmem:[%s5680_s3 + $0x90] ss:$8 sps:$4 sm:$0xff]   ;;  %v4038_v62 = vld [vmem:[%s5680_s3 + $0xb4] ss:$8 sps:$4 sm:$0xff]  }
 0x20d   :  { %v801_v36 = vadd.f32 %v3971_v12, %v4714_v25  ;;  %v792_v7 = vpop.f32.mrb[27].mxu1  ;;  %3515 = vmatpush3.bf16.msra.mxu0 %v5049_v58  ;;  %v846_v15 = vmax.f32 %v798_v6, 0.0  ;;  %v4037_v6 = vld [vmem:[%s5680_s3 + $0xa0] ss:$8 sps:$4 sm:$0xff]   ;;  %v4041_v12 = vld [vmem:[%s5680_s3 + $0xc4] ss:$8 sps:$4 sm:$0xff]  }
 0x20e   :  { %v793_v35 = vadd.f32 %v792_v7, %v4681_v39  ;;  %3516 = vmatprep.subr.bf16.mxu0 %v863_v13  ;;  %v844_v23 = vmax.f32 %v790_v21, 0.0  ;;  %v4032_v13 = vld [vmem:[%s5680_s3 + $0x94] ss:$8 sps:$4 sm:$0xff]   ;;  %v4040_v21 = vld [vmem:[%s5680_s3 + $0xb0] ss:$8 sps:$4 sm:$0xff]  }
 0x20f   :  { %v847_v63 = vmax.f32 %v801_v36, 0.0  ;;  %v4043_v36 = vld [vmem:[%s5680_s3 + $0xc0] ss:$8 sps:$4 sm:$0xff]   ;;  %v4044_v7 = vld [vmem:[%s5680_s3 + $0xd4] ss:$8 sps:$4 sm:$0xff]  }
 0x210   :  { %v845_v0 = vmax.f32 %v793_v35, 0.0  ;;  %v4046_v35 = vld [vmem:[%s5680_s3 + $0xd0] ss:$8 sps:$4 sm:$0xff]  }
 0x211   :  { %v865_v42 = vpack.c.bf16 %v847_v63, %v846_v15  ;;  %3517 = vmatpush3.bf16.msra.mxu0 %v5047_v34  ;;  %v4047_v15 = vld [vmem:[%s5680_s3 + $0xe4] ss:$8 sps:$4 sm:$0xff]   ;;  %v4049_v63 = vld [vmem:[%s5680_s3 + $0xe0] ss:$8 sps:$4 sm:$0xff]  }
 0x212   :  { %v864_v16 = vpack.c.bf16 %v845_v0, %v844_v23  ;;  %v3974_v27 = vpop.f32.mrb[28].mxu1  ;;  %v4050_v23 = vld [vmem:[%s5680_s3 + $0xf4] ss:$8 sps:$4 sm:$0xff]   ;;  %v4052_v0 = vld [vmem:[%s5680_s3 + $0xf0] ss:$8 sps:$4 sm:$0xff]  }
 0x213   :  { %v814_v38 = vadd.f32 %v3974_v27, %v4773_v49  ;;  %v805_v54 = vpop.f32.mrb[29].mxu1 }
 0x214   :  { %v806_v25 = vadd.f32 %v805_v54, %v4743_v2  ;;  %v3975_v1 = vpop.f32.mrb[30].mxu1  ;;  %3518 = vmatprep.subr.bf16.mxu0 %v864_v16  ;;  %v4005_v2 = vld [vmem:[%s5680_s3] ss:$8 sps:$4 sm:$0xff]  }
 0x215   :  { %v817_v58 = vadd.f32 %v3975_v1, %v4775_v52  ;;  %v808_v39 = vpop.f32.mrb[31].mxu1  ;;  %3519 = vmatpush3.bf16.msra.mxu0 %v5057_v59  ;;  %v850_v46 = vmax.f32 %v814_v38, 0.0  ;;  %v4010_v52 = vld [vmem:[%s5680_s3 + $0x10] ss:$8 sps:$4 sm:$0xff]   ;;  %v4013_v59 = vld [vmem:[%s5680_s3 + $0x20] ss:$8 sps:$4 sm:$0xff]  }
 0x216   :  { %v809_v57 = vadd.f32 %v808_v39, %v4745_v8  ;;  %3520 = vmatprep.subr.bf16.mxu0 %v865_v42  ;;  %v848_v34 = vmax.f32 %v806_v25, 0.0  ;;  %v4008_v8 = vld [vmem:[%s5680_s3 + $0x14] ss:$8 sps:$4 sm:$0xff]  }
 0x217   :  { %v851_v31 = vmax.f32 %v817_v58, 0.0  ;;  %v4055_v58 = vld [vmem:[%s5680_s3 + $0x104] ss:$8 sps:$4 sm:$0xff]  }
 0x218   :  { %v849_v56 = vmax.f32 %v809_v57, 0.0  ;;  %1880 = vmatprep.mubr.bf16.mxu1 %v4055_v58 }
 0x219   :  { %v867_v47 = vpack.c.bf16 %v851_v31, %v850_v46  ;;  %3521 = vmatpush3.bf16.msra.mxu0 %v5055_v3  ;;  %v4011_v3 = vld [vmem:[%s5680_s3 + $0x24] ss:$8 sps:$4 sm:$0xff]  }
 0x21a   :  { %v866_v49 = vpack.c.bf16 %v849_v56, %v848_v34 }
 0x21c   :  { %3522 = vmatprep.subr.bf16.mxu0 %v866_v49 }
 0x21d   :  { %3523 = vmatpush3.bf16.msra.mxu0 %v5065_v22  ;;  %v4016_v22 = vld [vmem:[%s5680_s3 + $0x30] ss:$8 sps:$4 sm:$0xff]  }
 0x21e   :  { %3524 = vmatprep.subr.bf16.mxu0 %v867_v47 }
 0x221   :  { %3525 = vmatpush3.bf16.msra.mxu0 %v5063_v10  ;;  %v4014_v10 = vld [vmem:[%s5680_s3 + $0x34] ss:$8 sps:$4 sm:$0xff]  }
 0x224   :  { %1286 = vmatmul.mubr.bf16.vlgmr.msra.gmra.mrb[16].mxu0 %v4005_v2 }
 0x225   :  { %1293 = vmatprep.mubr.bf16.mxu0 %v4008_v8 }
 0x22c   :  { %1294 = vmatmul.mubr.bf16.gmra.mrb[20].mxu0 %v4010_v52 }
 0x22d   :  { %1301 = vmatprep.mubr.bf16.mxu0 %v4011_v3 }
 0x234   :  { %1302 = vmatmul.mubr.bf16.gmra.mrb[24].mxu0 %v4013_v59 }
 0x235   :  { %1309 = vmatprep.mubr.bf16.mxu0 %v4014_v10 }
 0x23c   :  { %1310 = vmatmul.mubr.bf16.gmra.mrb[28].mxu0 %v4016_v22 }
 0x23d   :  { %1317 = vmatprep.mubr.bf16.mxu0 %v4017_v53 }
 0x244   :  { %1318 = vmatmul.mubr.bf16.gmra.mrb[32].mxu0 %v4019_v60 }
 0x245   :  { %1325 = vmatprep.mubr.bf16.mxu0 %v4020_v44 }
 0x24c   :  { %1326 = vmatmul.mubr.bf16.gmra.mrb[36].mxu0 %v4022_v50 }
 0x24d   :  { %1333 = vmatprep.mubr.bf16.mxu0 %v4023_v61 }
 0x254   :  { %1334 = vmatmul.mubr.bf16.gmra.mrb[40].mxu0 %v4025_v51 }
 0x255   :  { %1341 = vmatprep.mubr.bf16.mxu0 %v4026_v14 }
 0x25c   :  { %1342 = vmatmul.mubr.bf16.gmra.mrb[44].mxu0 %v4028_v26 }
 0x25d   :  { %1349 = vmatprep.mubr.bf16.mxu0 %v4029_v32 }
 0x264   :  { %1350 = vmatmul.mubr.bf16.gmra.mrb[48].mxu0 %v4031_v28 }
 0x265   :  { %1357 = vmatprep.mubr.bf16.mxu0 %v4032_v13 }
 0x26c   :  { %1358 = vmatmul.mubr.bf16.gmra.mrb[52].mxu0 %v4034_v20 }
 0x26d   :  { %1365 = vmatprep.mubr.bf16.mxu0 %v4035_v33 }
 0x274   :  { %1366 = vmatmul.mubr.bf16.gmra.mrb[56].mxu0 %v4037_v6 }
 0x275   :  { %1373 = vmatprep.mubr.bf16.mxu0 %v4038_v62 }
 0x27c   :  { %1374 = vmatmul.mubr.bf16.gmra.mrb[60].mxu0 %v4040_v21 }
 0x27d   :  { %1381 = vmatprep.mubr.bf16.mxu0 %v4041_v12 }
 0x284   :  { %1382 = vmatmul.mubr.bf16.gmra.mrb[64].mxu0 %v4043_v36 }
 0x285   :  { %1389 = vmatprep.mubr.bf16.mxu0 %v4044_v7 }
 0x28c   :  { %1390 = vmatmul.mubr.bf16.gmra.mrb[68].mxu0 %v4046_v35 }
 0x28d   :  { %1397 = vmatprep.mubr.bf16.mxu0 %v4047_v15 }
 0x294   :  { %1398 = vmatmul.mubr.bf16.gmra.mrb[72].mxu0 %v4049_v63 }
 0x295   :  { %1405 = vmatprep.mubr.bf16.mxu0 %v4050_v23 }
 0x29c   :  { %1406 = vmatmul.mubr.bf16.gmra.mrb[76].mxu0 %v4052_v0 }
 0x2f7   :  { %v3526_v42 = vpop.f32.mrb[16].mxu0 }
 0x2f8   :  { %v3527_v16 = vpop.f32.mrb[17].mxu0 }
 0x2f9   :  { %v3528_v27 = vadd.f32 %v3527_v16, %v3526_v42  ;;  %v3529_v38 = vpop.f32.mrb[18].mxu0 }
 0x2fa   :  { %v3530_v54 = vpop.f32.mrb[19].mxu0 }
 0x2fb   :  { %v1288_v25 = vadd.f32 %v3528_v27, %v4821_v11  ;;  %v3531_v1 = vadd.f32 %v3530_v54, %v3529_v38 }
 0x2fd   :  { %v1291_v39 = vadd.f32 %v3531_v1, %v4826_v17  ;;  %v1414_v57 = vmax.f32 %v1288_v25, 0.0 }
 0x2ff   :  { %v1415_v46 = vmax.f32 %v1291_v39, 0.0  ;;  %v3532_v31 = vpop.f32.mrb[20].mxu0 }
 0x300   :  { %v3533_v34 = vpop.f32.mrb[21].mxu0 }
 0x301   :  { %v5189_v56 = vpack.c.bf16 %v1415_v46, %v1414_v57  ;;  %v3534_v47 = vadd.f32 %v3533_v34, %v3532_v31  ;;  %v3535_v49 = vpop.f32.mrb[22].mxu0 }
 0x302   :  { %v3536_v2 = vpop.f32.mrb[23].mxu0 }
 0x303   :  { %v1296_v8 = vadd.f32 %v3534_v47, %v4859_v45  ;;  %v3537_v11 = vadd.f32 %v3536_v2, %v3535_v49 }
 0x305   :  { %v1299_v52 = vadd.f32 %v3537_v11, %v4864_v41  ;;  %v1416_v3 = vmax.f32 %v1296_v8, 0.0 }
 0x307   :  { %v1417_v59 = vmax.f32 %v1299_v52, 0.0  ;;  %v3538_v10 = vpop.f32.mrb[24].mxu0 }
 0x308   :  { %v3539_v22 = vpop.f32.mrb[25].mxu0 }
 0x309   :  { %v5193_v17 = vpack.c.bf16 %v1417_v59, %v1416_v3  ;;  %v3540_v53 = vadd.f32 %v3539_v22, %v3538_v10  ;;  %v3541_v60 = vpop.f32.mrb[26].mxu0 }
 0x30a   :  { %v3542_v44 = vpop.f32.mrb[27].mxu0 }
 0x30b   :  { %v1304_v50 = vadd.f32 %v3540_v53, %v4891_v4  ;;  %v3543_v61 = vadd.f32 %v3542_v44, %v3541_v60 }
 0x30d   :  { %v1307_v51 = vadd.f32 %v3543_v61, %v4896_v19  ;;  %v1418_v14 = vmax.f32 %v1304_v50, 0.0  ;;  %v1011_v50 = vpop.permute.xlu1 %1010 }
 0x30f   :  { %v1419_v26 = vmax.f32 %v1307_v51, 0.0  ;;  %v3544_v45 = vpop.f32.mrb[28].mxu0 }
 0x310   :  { %v3545_v32 = vpop.f32.mrb[29].mxu0 }
 0x311   :  { %v5197_v28 = vpack.c.bf16 %v1419_v26, %v1418_v14  ;;  %v3546_v41 = vadd.f32 %v3545_v32, %v3544_v45  ;;  %v3547_v13 = vpop.f32.mrb[30].mxu0 }
 0x312   :  { %v3548_v20 = vpop.f32.mrb[31].mxu0 }
 0x313   :  { %v1312_v33 = vadd.f32 %v3546_v41, %v4929_v48  ;;  %v3549_v6 = vadd.f32 %v3548_v20, %v3547_v13 }
 0x315   :  { %v1315_v62 = vadd.f32 %v3549_v6, %v4934_v55  ;;  %v1420_v21 = vmax.f32 %v1312_v33, 0.0 }
 0x317   :  { %v1421_v12 = vmax.f32 %v1315_v62, 0.0  ;;  %v3550_v4 = vpop.f32.mrb[32].mxu0 }
 0x318   :  { %v3551_v36 = vpop.f32.mrb[33].mxu0 }
 0x319   :  { %v5201_v7 = vpack.c.bf16 %v1421_v12, %v1420_v21  ;;  %v3552_v19 = vadd.f32 %v3551_v36, %v3550_v4  ;;  %v3553_v35 = vpop.f32.mrb[34].mxu0 }
 0x31a   :  { %v3554_v15 = vpop.f32.mrb[35].mxu0 }
 0x31b   :  { %v1320_v63 = vadd.f32 %v3552_v19, %v4958_v24  ;;  %v3555_v23 = vadd.f32 %v3554_v15, %v3553_v35  ;;  %v5700_v35 = vld [vmem:[#allocation6_spill] sm:$0xff] }
 0x31d   :  { %v1323_v0 = vadd.f32 %v3555_v23, %v4963_v29  ;;  %v1422_v42 = vmax.f32 %v1320_v63, 0.0  ;;  %v5701_v23 = vld [vmem:[#allocation7_spill] sm:$0xff] }
 0x31f   :  { %v1423_v16 = vmax.f32 %v1323_v0, 0.0  ;;  %v3556_v48 = vpop.f32.mrb[36].mxu0 }
 0x320   :  { %v3557_v27 = vpop.f32.mrb[37].mxu0 }
 0x321   :  { %v5205_v38 = vpack.c.bf16 %v1423_v16, %v1422_v42  ;;  %v3558_v55 = vadd.f32 %v3557_v27, %v3556_v48  ;;  %v3559_v54 = vpop.f32.mrb[38].mxu0 }
 0x322   :  { %v3560_v25 = vpop.f32.mrb[39].mxu0 }
 0x323   :  { %v1328_v1 = vadd.f32 %v3558_v55, %v4984_v18  ;;  %v3561_v58 = vadd.f32 %v3560_v25, %v3559_v54  ;;  %v5702_v25 = vld [vmem:[#allocation8_spill] sm:$0xff] }
 0x325   :  { %v1331_v39 = vadd.f32 %v3561_v58, %v4989_v9  ;;  %v1424_v57 = vmax.f32 %v1328_v1, 0.0 }
 0x327   :  { %v1425_v46 = vmax.f32 %v1331_v39, 0.0  ;;  %v3562_v24 = vpop.f32.mrb[40].mxu0  ;;  %v5703_v39 = vld [vmem:[#allocation9_spill] sm:$0xff] }
 0x328   :  { %v3563_v31 = vpop.f32.mrb[41].mxu0 }
 0x329   :  { %v5209_v34 = vpack.c.bf16 %v1425_v46, %v1424_v57  ;;  %v3564_v29 = vadd.f32 %v3563_v31, %v3562_v24  ;;  %v3565_v47 = vpop.f32.mrb[42].mxu0 }
 0x32a   :  { %v3566_v49 = vpop.f32.mrb[43].mxu0 }
 0x32b   :  { %v1336_v2 = vadd.f32 %v3564_v29, %v5010_v30  ;;  %v3567_v8 = vadd.f32 %v3566_v49, %v3565_v47 }
 0x32d   :  { %v1339_v11 = vadd.f32 %v3567_v8, %v5015_v40  ;;  %v1426_v52 = vmax.f32 %v1336_v2, 0.0  ;;  %v5704_v8 = vld [vmem:[#allocation10_spill] sm:$0xff] }
 0x32f   :  { %v1427_v3 = vmax.f32 %v1339_v11, 0.0  ;;  %v3568_v18 = vpop.f32.mrb[44].mxu0 }
 0x330   :  { %v3569_v59 = vpop.f32.mrb[45].mxu0 }
 0x331   :  { %v5213_v10 = vpack.c.bf16 %v1427_v3, %v1426_v52  ;;  %v3570_v9 = vadd.f32 %v3569_v59, %v3568_v18  ;;  %v3571_v22 = vpop.f32.mrb[46].mxu0  ;;  %v5705_v3 = vld [vmem:[#allocation11_spill] sm:$0xff] }
 0x332   :  { %v3572_v53 = vpop.f32.mrb[47].mxu0 }
 0x333   :  { %v1344_v60 = vadd.f32 %v3570_v9, %v5030_v43  ;;  %v3573_v44 = vadd.f32 %v3572_v53, %v3571_v22 }
 0x335   :  { %v1347_v61 = vadd.f32 %v3573_v44, %v1011_v50  ;;  %v1428_v51 = vmax.f32 %v1344_v60, 0.0 }
 0x337   :  { %v1429_v14 = vmax.f32 %v1347_v61, 0.0  ;;  %v3574_v30 = vpop.f32.mrb[48].mxu0  ;;  %v5706_v61 = vld [vmem:[#allocation12_spill] sm:$0xff] }
 0x338   :  { %v3575_v26 = vpop.f32.mrb[49].mxu0 }
 0x339   :  { %v5216_v45 = vpack.c.bf16 %v1429_v14, %v1428_v51  ;;  %v3576_v40 = vadd.f32 %v3575_v26, %v3574_v30  ;;  %v3577_v32 = vpop.f32.mrb[50].mxu0  ;;  %v5707_v30 = vld [vmem:[#allocation13_spill] sm:$0xff] }
 0x33a   :  { %v3578_v41 = vpop.f32.mrb[51].mxu0 }
 0x33b   :  { %v1352_v13 = vadd.f32 %v3576_v40, %v4805_v37  ;;  %v3579_v20 = vadd.f32 %v3578_v41, %v3577_v32 }
 0x33d   :  { %v1355_v33 = vadd.f32 %v3579_v20, %v4810_v5  ;;  %v1430_v6 = vmax.f32 %v1352_v13, 0.0 }
 0x33f   :  { %v1431_v62 = vmax.f32 %v1355_v33, 0.0  ;;  %v3580_v43 = vpop.f32.mrb[52].mxu0 }
 0x340   :  { %v3581_v21 = vpop.f32.mrb[53].mxu0 }
 0x341   :  { %v3582_v12 = vadd.f32 %v3581_v21, %v3580_v43  ;;  %v3583_v4 = vpop.f32.mrb[54].mxu0  ;;  %v1454_v36 = vpack.c.bf16 %v1431_v62, %v1430_v6  ;;  %v5708_v62 = vld [vmem:[#allocation14_spill] sm:$0xff] }
 0x342   :  { %v3584_v19 = vpop.f32.mrb[55].mxu0 }
 0x343   :  { %v1360_v15 = vadd.f32 %v3582_v12, %v5700_v35  ;;  %v3585_v63 = vadd.f32 %v3584_v19, %v3583_v4  ;;  %3622 = vmatprep.subr.bf16.mxu1 %v1454_v36  ;;  %v5709_v12 = vld [vmem:[#allocation15_spill] sm:$0xff] }
 0x344   :  { %3623 = vmatpush3.bf16.msra.mxu1 %v5189_v56 }
 0x345   :  { %v1363_v0 = vadd.f32 %v3585_v63, %v5701_v23  ;;  %v1432_v37 = vmax.f32 %v1360_v15, 0.0 }
 0x347   :  { %v1433_v42 = vmax.f32 %v1363_v0, 0.0  ;;  %v3586_v16 = vpop.f32.mrb[56].mxu0 }
 0x348   :  { %v3587_v5 = vpop.f32.mrb[57].mxu0 }
 0x349   :  { %v3588_v48 = vadd.f32 %v3587_v5, %v3586_v16  ;;  %v3589_v27 = vpop.f32.mrb[58].mxu0  ;;  %v1455_v55 = vpack.c.bf16 %v1433_v42, %v1432_v37  ;;  %v5710_v37 = vld [vmem:[#allocation16_spill] sm:$0xff]  ;;  %v5711_v5 = vld [vmem:[#allocation17_spill] sm:$0xff] }
 0x34a   :  { %v3590_v54 = vpop.f32.mrb[59].mxu0 }
 0x34b   :  { %v1368_v1 = vadd.f32 %v3588_v48, %v5702_v25  ;;  %v3591_v58 = vadd.f32 %v3590_v54, %v3589_v27  ;;  %3624 = vmatprep.subr.bf16.mxu1 %v1455_v55 }
 0x34c   :  { %3625 = vmatpush3.bf16.msra.mxu1 %v5193_v17 }
 0x34d   :  { %v1371_v57 = vadd.f32 %v3591_v58, %v5703_v39  ;;  %v1434_v46 = vmax.f32 %v1368_v1, 0.0 }
 0x34f   :  { %v1435_v56 = vmax.f32 %v1371_v57, 0.0  ;;  %v3592_v24 = vpop.f32.mrb[60].mxu0  ;;  %v5712_v57 = vld [vmem:[#allocation18_spill] sm:$0xff] }
 0x350   :  { %v3593_v31 = vpop.f32.mrb[61].mxu0 }
 0x351   :  { %v3594_v29 = vadd.f32 %v3593_v31, %v3592_v24  ;;  %v3595_v47 = vpop.f32.mrb[62].mxu0  ;;  %v1456_v49 = vpack.c.bf16 %v1435_v56, %v1434_v46  ;;  %v5713_v24 = vld [vmem:[#allocation19_spill] sm:$0xff] }
 0x352   :  { %v3596_v2 = vpop.f32.mrb[63].mxu0 }
 0x353   :  { %v1376_v11 = vadd.f32 %v3594_v29, %v5704_v8  ;;  %v3597_v52 = vadd.f32 %v3596_v2, %v3595_v47  ;;  %3626 = vmatprep.subr.bf16.mxu1 %v1456_v49  ;;  %v4053_v49 = vld [vmem:[%s5680_s3 + $0x100] ss:$8 sps:$4 sm:$0xff]   ;;  %v4056_v2 = vld [vmem:[%s5680_s3 + $0x114] ss:$8 sps:$4 sm:$0xff]   ;;  %v4059_v8 = vld [vmem:[%s5680_s3 + $0x124] ss:$8 sps:$4 sm:$0xff]  }
 0x354   :  { %3627 = vmatpush3.bf16.msra.mxu1 %v5197_v28 }
 0x355   :  { %v1379_v18 = vadd.f32 %v3597_v52, %v5705_v3  ;;  %v1436_v59 = vmax.f32 %v1376_v11, 0.0  ;;  %v4062_v11 = vld [vmem:[%s5680_s3 + $0x134] ss:$8 sps:$4 sm:$0xff]   ;;  %v4064_v52 = vld [vmem:[%s5680_s3 + $0x130] ss:$8 sps:$4 sm:$0xff]  }
 0x356   :  { %v4065_v3 = vld [vmem:[%s5680_s3 + $0x144] ss:$8 sps:$4 sm:$0xff]  }
 0x357   :  { %v1437_v17 = vmax.f32 %v1379_v18, 0.0  ;;  %v3598_v9 = vpop.f32.mrb[64].mxu0  ;;  %v4067_v18 = vld [vmem:[%s5680_s3 + $0x140] ss:$8 sps:$4 sm:$0xff]  }
 0x358   :  { %v3599_v22 = vpop.f32.mrb[65].mxu0 }
 0x359   :  { %v3600_v53 = vadd.f32 %v3599_v22, %v3598_v9  ;;  %v3601_v60 = vpop.f32.mrb[66].mxu0  ;;  %v1457_v44 = vpack.c.bf16 %v1437_v17, %v1436_v59  ;;  %v4068_v59 = vld [vmem:[%s5680_s3 + $0x154] ss:$8 sps:$4 sm:$0xff]   ;;  %v4070_v17 = vld [vmem:[%s5680_s3 + $0x150] ss:$8 sps:$4 sm:$0xff]  }
 0x35a   :  { %v3602_v50 = vpop.f32.mrb[67].mxu0  ;;  %v4071_v9 = vld [vmem:[%s5680_s3 + $0x164] ss:$8 sps:$4 sm:$0xff]   ;;  %v4073_v22 = vld [vmem:[%s5680_s3 + $0x160] ss:$8 sps:$4 sm:$0xff]  }
 0x35b   :  { %v1384_v51 = vadd.f32 %v3600_v53, %v5706_v61  ;;  %v3603_v14 = vadd.f32 %v3602_v50, %v3601_v60  ;;  %3628 = vmatprep.subr.bf16.mxu1 %v1457_v44  ;;  %v4074_v53 = vld [vmem:[%s5680_s3 + $0x174] ss:$8 sps:$4 sm:$0xff]   ;;  %v4076_v60 = vld [vmem:[%s5680_s3 + $0x170] ss:$8 sps:$4 sm:$0xff]   ;;  %v4077_v44 = vld [vmem:[%s5680_s3 + $0x184] ss:$8 sps:$4 sm:$0xff]  }
 0x35c   :  { %3629 = vmatpush3.bf16.msra.mxu1 %v5201_v7  ;;  %v4079_v50 = vld [vmem:[%s5680_s3 + $0x180] ss:$8 sps:$4 sm:$0xff]   ;;  %v4080_v61 = vld [vmem:[%s5680_s3 + $0x194] ss:$8 sps:$4 sm:$0xff]  }
 0x35d   :  { %v1387_v26 = vadd.f32 %v3603_v14, %v5707_v30  ;;  %v1438_v40 = vmax.f32 %v1384_v51, 0.0  ;;  %v4082_v51 = vld [vmem:[%s5680_s3 + $0x190] ss:$8 sps:$4 sm:$0xff]   ;;  %v4083_v14 = vld [vmem:[%s5680_s3 + $0x1a4] ss:$8 sps:$4 sm:$0xff]  }
 0x35e   :  { %v4085_v30 = vld [vmem:[%s5680_s3 + $0x1a0] ss:$8 sps:$4 sm:$0xff]  }
 0x35f   :  { %v1439_v28 = vmax.f32 %v1387_v26, 0.0  ;;  %v3604_v32 = vpop.f32.mrb[68].mxu0  ;;  %v4086_v26 = vld [vmem:[%s5680_s3 + $0x1b4] ss:$8 sps:$4 sm:$0xff]  }
 0x360   :  { %v3605_v41 = vpop.f32.mrb[69].mxu0 }
 0x361   :  { %v3606_v13 = vadd.f32 %v3605_v41, %v3604_v32  ;;  %v3607_v20 = vpop.f32.mrb[70].mxu0  ;;  %v1458_v33 = vpack.c.bf16 %v1439_v28, %v1438_v40  ;;  %v4088_v40 = vld [vmem:[%s5680_s3 + $0x1b0] ss:$8 sps:$4 sm:$0xff]   ;;  %v4089_v28 = vld [vmem:[%s5680_s3 + $0x1c4] ss:$8 sps:$4 sm:$0xff]  }
 0x362   :  { %v3608_v6 = vpop.f32.mrb[71].mxu0  ;;  %v4091_v32 = vld [vmem:[%s5680_s3 + $0x1c0] ss:$8 sps:$4 sm:$0xff]   ;;  %v4092_v41 = vld [vmem:[%s5680_s3 + $0x1d4] ss:$8 sps:$4 sm:$0xff]  }
 0x363   :  { %v1392_v43 = vadd.f32 %v3606_v13, %v5708_v62  ;;  %v3609_v21 = vadd.f32 %v3608_v6, %v3607_v20  ;;  %3630 = vmatprep.subr.bf16.mxu1 %v1458_v33  ;;  %v4094_v13 = vld [vmem:[%s5680_s3 + $0x1d0] ss:$8 sps:$4 sm:$0xff]   ;;  %v4095_v20 = vld [vmem:[%s5680_s3 + $0x1e4] ss:$8 sps:$4 sm:$0xff]   ;;  %v4097_v33 = vld [vmem:[%s5680_s3 + $0x1e0] ss:$8 sps:$4 sm:$0xff]  }
 0x364   :  { %3631 = vmatpush3.bf16.msra.mxu1 %v5205_v38  ;;  %v4098_v6 = vld [vmem:[%s5680_s3 + $0x1f4] ss:$8 sps:$4 sm:$0xff]   ;;  %v4100_v62 = vld [vmem:[%s5680_s3 + $0x1f0] ss:$8 sps:$4 sm:$0xff]  }
 0x365   :  { %v1395_v4 = vadd.f32 %v3609_v21, %v5709_v12  ;;  %v1440_v36 = vmax.f32 %v1392_v43, 0.0  ;;  %v5335_v43 = vpop.permute.xlu0 %1610  ;;  %v5337_v21 = vpop.permute.xlu1 %1615 }
 0x367   :  { %v1441_v7 = vmax.f32 %v1395_v4, 0.0  ;;  %v3610_v19 = vpop.f32.mrb[72].mxu0 }
 0x368   :  { %v3611_v35 = vpop.f32.mrb[73].mxu0 }
 0x369   :  { %v3612_v15 = vadd.f32 %v3611_v35, %v3610_v19  ;;  %v3613_v63 = vpop.f32.mrb[74].mxu0  ;;  %v1459_v23 = vpack.c.bf16 %v1441_v7, %v1440_v36  ;;  %v1531_v12 = vpop.permute.xlu0 %1530 }
 0x36a   :  { %v3614_v0 = vpop.f32.mrb[75].mxu0  ;;  %v1536_v4 = vpop.permute.xlu1 %1535 }
 0x36b   :  { %v1400_v42 = vadd.f32 %v3612_v15, %v5710_v37  ;;  %v3615_v16 = vadd.f32 %v3614_v0, %v3613_v63  ;;  %3632 = vmatprep.subr.bf16.mxu1 %v1459_v23 }
 0x36c   :  { %3633 = vmatpush3.bf16.msra.mxu1 %v5209_v34 }
 0x36d   :  { %v1403_v48 = vadd.f32 %v3615_v16, %v5711_v5  ;;  %v1442_v27 = vmax.f32 %v1400_v42, 0.0  ;;  %v5339_v36 = vpop.permute.xlu0 %1620 }
 0x36e   :  { %v5341_v7 = vpop.permute.xlu1 %1625 }
 0x36f   :  { %v1443_v38 = vmax.f32 %v1403_v48, 0.0  ;;  %v3616_v55 = vpop.f32.mrb[76].mxu0 }
 0x370   :  { %v3617_v54 = vpop.f32.mrb[77].mxu0 }
 0x371   :  { %v3618_v25 = vadd.f32 %v3617_v54, %v3616_v55  ;;  %v3619_v1 = vpop.f32.mrb[78].mxu0  ;;  %v1460_v58 = vpack.c.bf16 %v1443_v38, %v1442_v27  ;;  %v1541_v19 = vpop.permute.xlu0 %1540  ;;  %v4103_v54 = vld [vmem:[%s5680_s3 + $0x204] ss:$8 sps:$4 sm:$0xff]  }
 0x372   :  { %v3620_v39 = vpop.f32.mrb[79].mxu0  ;;  %v1546_v35 = vpop.permute.xlu1 %1545  ;;  %2475 = vmatprep.mubr.bf16.mxu0 %v4103_v54 }
 0x373   :  { %v1408_v46 = vadd.f32 %v3618_v25, %v5712_v57  ;;  %v3621_v56 = vadd.f32 %v3620_v39, %v3619_v1  ;;  %3634 = vmatprep.subr.bf16.mxu1 %v1460_v58 }
 0x374   :  { %3635 = vmatpush3.bf16.msra.mxu1 %v5213_v10  ;;  %v4058_v10 = vld [vmem:[%s5680_s3 + $0x110] ss:$8 sps:$4 sm:$0xff]  }
 0x375   :  { %v1411_v31 = vadd.f32 %v3621_v56, %v5713_v24  ;;  %v1444_v29 = vmax.f32 %v1408_v46, 0.0  ;;  %v5343_v15 = vpop.permute.xlu0 %1630 }
 0x376   :  { %v5345_v63 = vpop.permute.xlu1 %1635 }
 0x377   :  { %v1445_v34 = vmax.f32 %v1411_v31, 0.0 }
 0x379   :  { %v1461_v47 = vpack.c.bf16 %v1445_v34, %v1444_v29  ;;  %v1551_v23 = vpop.permute.xlu0 %1550 }
 0x37a   :  { %v1556_v37 = vpop.permute.xlu1 %1555 }
 0x37b   :  { %3636 = vmatprep.subr.bf16.mxu1 %v1461_v47 }
 0x37c   :  { %3637 = vmatpush3.bf16.msra.mxu1 %v5216_v45  ;;  %v4061_v45 = vld [vmem:[%s5680_s3 + $0x120] ss:$8 sps:$4 sm:$0xff]  }
 0x37d   :  { %v5347_v55 = vpop.permute.xlu0 %1640 }
 0x37e   :  { %v5352_v1 = vpop.permute.xlu1 %1645 }
 0x37f   :  { %1881 = vmatmul.mubr.bf16.vlgmr.msra.gmra.mrb[32].mxu1 %v4053_v49 }
 0x380   :  { %1888 = vmatprep.mubr.bf16.mxu1 %v4056_v2 }
 0x381   :  { %v1561_v29 = vpop.permute.xlu0 %1560 }
 0x382   :  { %v1566_v2 = vpop.permute.xlu1 %1565 }
 0x387   :  { %1889 = vmatmul.mubr.bf16.gmra.mrb[36].mxu1 %v4058_v10 }
 0x388   :  { %1896 = vmatprep.mubr.bf16.mxu1 %v4059_v8 }
 0x38f   :  { %1897 = vmatmul.mubr.bf16.gmra.mrb[40].mxu1 %v4061_v45 }
 0x390   :  { %1904 = vmatprep.mubr.bf16.mxu1 %v4062_v11 }
 0x397   :  { %1905 = vmatmul.mubr.bf16.gmra.mrb[44].mxu1 %v4064_v52  ;;  %v5356_v52 = vpop.permute.xlu0 %1650 }
 0x398   :  { %1912 = vmatprep.mubr.bf16.mxu1 %v4065_v3 }
 0x39f   :  { %1913 = vmatmul.mubr.bf16.gmra.mrb[48].mxu1 %v4067_v18 }
 0x3a0   :  { %1920 = vmatprep.mubr.bf16.mxu1 %v4068_v59 }
 0x3a7   :  { %1921 = vmatmul.mubr.bf16.gmra.mrb[52].mxu1 %v4070_v17 }
 0x3a8   :  { %1928 = vmatprep.mubr.bf16.mxu1 %v4071_v9  ;;  %v5360_v9 = vpop.permute.xlu1 %1655 }
 0x3af   :  { %1929 = vmatmul.mubr.bf16.gmra.mrb[56].mxu1 %v4073_v22 }
 0x3b0   :  { %1936 = vmatprep.mubr.bf16.mxu1 %v4074_v53 }
 0x3b7   :  { %1937 = vmatmul.mubr.bf16.gmra.mrb[60].mxu1 %v4076_v60 }
 0x3b8   :  { %1944 = vmatprep.mubr.bf16.mxu1 %v4077_v44 }
 0x3bf   :  { %1945 = vmatmul.mubr.bf16.gmra.mrb[64].mxu1 %v4079_v50  ;;  %v1571_v50 = vpop.permute.xlu0 %1570 }
 0x3c0   :  { %1952 = vmatprep.mubr.bf16.mxu1 %v4080_v61 }
 0x3c7   :  { %1953 = vmatmul.mubr.bf16.gmra.mrb[68].mxu1 %v4082_v51 }
 0x3c8   :  { %1960 = vmatprep.mubr.bf16.mxu1 %v4083_v14 }
 0x3cf   :  { %1961 = vmatmul.mubr.bf16.gmra.mrb[72].mxu1 %v4085_v30  ;;  %v1576_v30 = vpop.permute.xlu1 %1575 }
 0x3d0   :  { %1968 = vmatprep.mubr.bf16.mxu1 %v4086_v26 }
 0x3d7   :  { %1969 = vmatmul.mubr.bf16.gmra.mrb[76].mxu1 %v4088_v40 }
 0x3d8   :  { %1976 = vmatprep.mubr.bf16.mxu1 %v4089_v28 }
 0x3df   :  { %1977 = vmatmul.mubr.bf16.gmra.mrb[80].mxu1 %v4091_v32 }
 0x3e0   :  { %1984 = vmatprep.mubr.bf16.mxu1 %v4092_v41 }
 0x3e7   :  { %1985 = vmatmul.mubr.bf16.gmra.mrb[84].mxu1 %v4094_v13 }
 0x3e8   :  { %1992 = vmatprep.mubr.bf16.mxu1 %v4095_v20 }
 0x3ef   :  { %1993 = vmatmul.mubr.bf16.gmra.mrb[88].mxu1 %v4097_v33  ;;  %v5364_v33 = vpop.permute.xlu0 %1660 }
 0x3f0   :  { %2000 = vmatprep.mubr.bf16.mxu1 %v4098_v6 }
 0x3f7   :  { %2001 = vmatmul.mubr.bf16.gmra.mrb[92].mxu1 %v4100_v62  ;;  %v5366_v62 = vpop.permute.xlu1 %1665 }
 0x452   :  { %v3638_v0 = vpop.f32.mrb[32].mxu1 }
 0x453   :  { %v3639_v42 = vpop.f32.mrb[33].mxu1 }
 0x454   :  { %v3640_v16 = vadd.f32 %v3639_v42, %v3638_v0  ;;  %v3641_v5 = vpop.f32.mrb[34].mxu1  ;;  %v1581_v42 = vpop.permute.xlu0 %1580 }
 0x455   :  { %v3642_v48 = vpop.f32.mrb[35].mxu1 }
 0x456   :  { %v1883_v27 = vadd.f32 %v3640_v16, %v1531_v12  ;;  %v3643_v38 = vadd.f32 %v3642_v48, %v3641_v5 }
 0x458   :  { %v1886_v25 = vadd.f32 %v3643_v38, %v1536_v4  ;;  %v2009_v58 = vmax.f32 %v1883_v27, 0.0  ;;  %v1586_v27 = vpop.permute.xlu1 %1585 }
 0x45a   :  { %v2010_v39 = vmax.f32 %v1886_v25, 0.0  ;;  %v3644_v57 = vpop.f32.mrb[36].mxu1 }
 0x45b   :  { %v3645_v46 = vpop.f32.mrb[37].mxu1 }
 0x45c   :  { %v5354_v56 = vpack.c.bf16 %v2010_v39, %v2009_v58  ;;  %v3646_v24 = vadd.f32 %v3645_v46, %v3644_v57  ;;  %v3647_v31 = vpop.f32.mrb[38].mxu1  ;;  %v5370_v39 = vpop.permute.xlu0 %1670 }
 0x45d   :  { %v3648_v34 = vpop.f32.mrb[39].mxu1 }
 0x45e   :  { %v1891_v47 = vadd.f32 %v3646_v24, %v1541_v19  ;;  %v3649_v49 = vadd.f32 %v3648_v34, %v3647_v31 }
 0x460   :  { %v1894_v10 = vadd.f32 %v3649_v49, %v1546_v35  ;;  %v2011_v8 = vmax.f32 %v1891_v47, 0.0 }
 0x462   :  { %v2012_v45 = vmax.f32 %v1894_v10, 0.0  ;;  %v3650_v11 = vpop.f32.mrb[40].mxu1  ;;  %v1591_v10 = vpop.permute.xlu0 %1590 }
 0x463   :  { %v3651_v3 = vpop.f32.mrb[41].mxu1 }
 0x464   :  { %v5358_v18 = vpack.c.bf16 %v2012_v45, %v2011_v8  ;;  %v3652_v59 = vadd.f32 %v3651_v3, %v3650_v11  ;;  %v3653_v17 = vpop.f32.mrb[42].mxu1 }
 0x465   :  { %v3654_v22 = vpop.f32.mrb[43].mxu1 }
 0x466   :  { %v1899_v53 = vadd.f32 %v3652_v59, %v1551_v23  ;;  %v3655_v60 = vadd.f32 %v3654_v22, %v3653_v17 }
 0x468   :  { %v1902_v44 = vadd.f32 %v3655_v60, %v1556_v37  ;;  %v2013_v61 = vmax.f32 %v1899_v53, 0.0 }
 0x46a   :  { %v2014_v51 = vmax.f32 %v1902_v44, 0.0  ;;  %v3656_v14 = vpop.f32.mrb[44].mxu1 }
 0x46b   :  { %v3657_v26 = vpop.f32.mrb[45].mxu1 }
 0x46c   :  { %v5362_v40 = vpack.c.bf16 %v2014_v51, %v2013_v61  ;;  %v3658_v28 = vadd.f32 %v3657_v26, %v3656_v14  ;;  %v3659_v32 = vpop.f32.mrb[46].mxu1  ;;  %v5378_v61 = vpop.permute.xlu0 %1680 }
 0x46d   :  { %v3660_v41 = vpop.f32.mrb[47].mxu1 }
 0x46e   :  { %v1907_v13 = vadd.f32 %v3658_v28, %v1561_v29  ;;  %v3661_v20 = vadd.f32 %v3660_v41, %v3659_v32  ;;  %v5374_v29 = vpop.permute.xlu1 %1675 }
 0x470   :  { %v1910_v6 = vadd.f32 %v3661_v20, %v1566_v2  ;;  %v2015_v12 = vmax.f32 %v1907_v13, 0.0 }
 0x472   :  { %v2016_v4 = vmax.f32 %v1910_v6, 0.0  ;;  %v3662_v19 = vpop.f32.mrb[48].mxu1  ;;  %v1596_v3 = vpop.permute.xlu1 %1595 }
 0x473   :  { %v3663_v35 = vpop.f32.mrb[49].mxu1  ;;  %v1601_v6 = vpop.permute.xlu0 %1600 }
 0x474   :  { %v5368_v23 = vpack.c.bf16 %v2016_v4, %v2015_v12  ;;  %v3664_v0 = vadd.f32 %v3663_v35, %v3662_v19  ;;  %v3665_v37 = vpop.f32.mrb[50].mxu1 }
 0x475   :  { %v3666_v16 = vpop.f32.mrb[51].mxu1 }
 0x476   :  { %v1915_v5 = vadd.f32 %v3664_v0, %v1571_v50  ;;  %v3667_v48 = vadd.f32 %v3666_v16, %v3665_v37  ;;  %v5380_v14 = vpop.permute.xlu1 %1685 }
 0x478   :  { %v1918_v38 = vadd.f32 %v3667_v48, %v1576_v30  ;;  %v2017_v54 = vmax.f32 %v1915_v5, 0.0 }
 0x47a   :  { %v2018_v25 = vmax.f32 %v1918_v38, 0.0  ;;  %v3668_v58 = vpop.f32.mrb[52].mxu1  ;;  %v1606_v35 = vpop.permute.xlu1 %1605 }
 0x47b   :  { %v3669_v57 = vpop.f32.mrb[53].mxu1 }
 0x47c   :  { %v5372_v46 = vpack.c.bf16 %v2018_v25, %v2017_v54  ;;  %v3670_v24 = vadd.f32 %v3669_v57, %v3668_v58  ;;  %v3671_v31 = vpop.f32.mrb[54].mxu1 }
 0x47d   :  { %v3672_v34 = vpop.f32.mrb[55].mxu1 }
 0x47e   :  { %v1923_v47 = vadd.f32 %v3670_v24, %v1581_v42  ;;  %v3673_v49 = vadd.f32 %v3672_v34, %v3671_v31 }
 0x480   :  { %v1926_v2 = vadd.f32 %v3673_v49, %v1586_v27  ;;  %v2019_v8 = vmax.f32 %v1923_v47, 0.0 }
 0x482   :  { %v2020_v45 = vmax.f32 %v1926_v2, 0.0  ;;  %v3674_v11 = vpop.f32.mrb[56].mxu1 }
 0x483   :  { %v3675_v59 = vpop.f32.mrb[57].mxu1 }
 0x484   :  { %v5376_v17 = vpack.c.bf16 %v2020_v45, %v2019_v8  ;;  %v3676_v22 = vadd.f32 %v3675_v59, %v3674_v11  ;;  %v3677_v53 = vpop.f32.mrb[58].mxu1 }
 0x485   :  { %v3678_v60 = vpop.f32.mrb[59].mxu1 }
 0x486   :  { %v1931_v44 = vadd.f32 %v3676_v22, %v1591_v10  ;;  %v3679_v50 = vadd.f32 %v3678_v60, %v3677_v53 }
 0x488   :  { %v1934_v51 = vadd.f32 %v3679_v50, %v1596_v3  ;;  %v2021_v30 = vmax.f32 %v1931_v44, 0.0 }
 0x48a   :  { %v2022_v26 = vmax.f32 %v1934_v51, 0.0  ;;  %v3680_v28 = vpop.f32.mrb[60].mxu1 }
 0x48b   :  { %v3681_v32 = vpop.f32.mrb[61].mxu1 }
 0x48c   :  { %v5382_v41 = vpack.c.bf16 %v2022_v26, %v2021_v30  ;;  %v3682_v13 = vadd.f32 %v3681_v32, %v3680_v28  ;;  %v3683_v20 = vpop.f32.mrb[62].mxu1 }
 0x48d   :  { %v3684_v12 = vpop.f32.mrb[63].mxu1 }
 0x48e   :  { %v1939_v4 = vadd.f32 %v3682_v13, %v1601_v6  ;;  %v3685_v19 = vadd.f32 %v3684_v12, %v3683_v20 }
 0x490   :  { %v1942_v0 = vadd.f32 %v3685_v19, %v1606_v35  ;;  %v2023_v37 = vmax.f32 %v1939_v4, 0.0 }
 0x492   :  { %v2024_v42 = vmax.f32 %v1942_v0, 0.0  ;;  %v3686_v16 = vpop.f32.mrb[64].mxu1 }
 0x493   :  { %v3687_v5 = vpop.f32.mrb[65].mxu1 }
 0x494   :  { %v5384_v48 = vpack.c.bf16 %v2024_v42, %v2023_v37  ;;  %v3688_v27 = vadd.f32 %v3687_v5, %v3686_v16  ;;  %v3689_v38 = vpop.f32.mrb[66].mxu1 }
 0x495   :  { %v3690_v54 = vpop.f32.mrb[67].mxu1 }
 0x496   :  { %v1947_v25 = vadd.f32 %v3688_v27, %v5335_v43  ;;  %v3691_v58 = vadd.f32 %v3690_v54, %v3689_v38 }
 0x498   :  { %v1950_v57 = vadd.f32 %v3691_v58, %v5337_v21  ;;  %v2025_v24 = vmax.f32 %v1947_v25, 0.0 }
 0x49a   :  { %v2026_v31 = vmax.f32 %v1950_v57, 0.0  ;;  %v3692_v34 = vpop.f32.mrb[68].mxu1 }
 0x49b   :  { %v3693_v47 = vpop.f32.mrb[69].mxu1 }
 0x49c   :  { %v3694_v49 = vadd.f32 %v3693_v47, %v3692_v34  ;;  %v3695_v2 = vpop.f32.mrb[70].mxu1  ;;  %v2049_v10 = vpack.c.bf16 %v2026_v31, %v2025_v24 }
 0x49d   :  { %v3696_v8 = vpop.f32.mrb[71].mxu1 }
 0x49e   :  { %v1955_v45 = vadd.f32 %v3694_v49, %v5339_v36  ;;  %v3697_v11 = vadd.f32 %v3696_v8, %v3695_v2  ;;  %3734 = vmatprep.subr.bf16.mxu0 %v2049_v10 }
 0x49f   :  { %3735 = vmatpush3.bf16.msra.mxu0 %v5354_v56 }
 0x4a0   :  { %v1958_v3 = vadd.f32 %v3697_v11, %v5341_v7  ;;  %v2027_v43 = vmax.f32 %v1955_v45, 0.0 }
 0x4a2   :  { %v2028_v59 = vmax.f32 %v1958_v3, 0.0  ;;  %v3698_v22 = vpop.f32.mrb[72].mxu1 }
 0x4a3   :  { %v3699_v21 = vpop.f32.mrb[73].mxu1 }
 0x4a4   :  { %v3700_v53 = vadd.f32 %v3699_v21, %v3698_v22  ;;  %v3701_v60 = vpop.f32.mrb[74].mxu1  ;;  %v2050_v44 = vpack.c.bf16 %v2028_v59, %v2027_v43 }
 0x4a5   :  { %v3702_v50 = vpop.f32.mrb[75].mxu1 }
 0x4a6   :  { %v1963_v51 = vadd.f32 %v3700_v53, %v5343_v15  ;;  %v3703_v30 = vadd.f32 %v3702_v50, %v3701_v60  ;;  %3736 = vmatprep.subr.bf16.mxu0 %v2050_v44 }
 0x4a7   :  { %3737 = vmatpush3.bf16.msra.mxu0 %v5358_v18 }
 0x4a8   :  { %v1966_v36 = vadd.f32 %v3703_v30, %v5345_v63  ;;  %v2029_v26 = vmax.f32 %v1963_v51, 0.0 }
 0x4aa   :  { %v2030_v56 = vmax.f32 %v1966_v36, 0.0  ;;  %v3704_v28 = vpop.f32.mrb[76].mxu1  ;;  %v4110_v36 = vld [vmem:[%s5680_s3 + $0x234] ss:$8 sps:$4 sm:$0xff]  }
 0x4ab   :  { %v3705_v7 = vpop.f32.mrb[77].mxu1 }
 0x4ac   :  { %v3706_v32 = vadd.f32 %v3705_v7, %v3704_v28  ;;  %v3707_v13 = vpop.f32.mrb[78].mxu1  ;;  %v2051_v20 = vpack.c.bf16 %v2030_v56, %v2029_v26  ;;  %v4112_v26 = vld [vmem:[%s5680_s3 + $0x230] ss:$8 sps:$4 sm:$0xff]   ;;  %v4113_v56 = vld [vmem:[%s5680_s3 + $0x244] ss:$8 sps:$4 sm:$0xff]  }
 0x4ad   :  { %v3708_v6 = vpop.f32.mrb[79].mxu1  ;;  %v4115_v28 = vld [vmem:[%s5680_s3 + $0x240] ss:$8 sps:$4 sm:$0xff]   ;;  %v4116_v7 = vld [vmem:[%s5680_s3 + $0x254] ss:$8 sps:$4 sm:$0xff]  }
 0x4ae   :  { %v1971_v12 = vadd.f32 %v3706_v32, %v5347_v55  ;;  %v3709_v4 = vadd.f32 %v3708_v6, %v3707_v13  ;;  %3738 = vmatprep.subr.bf16.mxu0 %v2051_v20  ;;  %v4118_v32 = vld [vmem:[%s5680_s3 + $0x250] ss:$8 sps:$4 sm:$0xff]   ;;  %v4119_v13 = vld [vmem:[%s5680_s3 + $0x264] ss:$8 sps:$4 sm:$0xff]   ;;  %v4121_v20 = vld [vmem:[%s5680_s3 + $0x260] ss:$8 sps:$4 sm:$0xff]  }
 0x4af   :  { %3739 = vmatpush3.bf16.msra.mxu0 %v5362_v40  ;;  %v4122_v6 = vld [vmem:[%s5680_s3 + $0x274] ss:$8 sps:$4 sm:$0xff]  }
 0x4b0   :  { %v1974_v15 = vadd.f32 %v3709_v4, %v5352_v1  ;;  %v2031_v19 = vmax.f32 %v1971_v12, 0.0  ;;  %v4124_v12 = vld [vmem:[%s5680_s3 + $0x270] ss:$8 sps:$4 sm:$0xff]   ;;  %v4125_v4 = vld [vmem:[%s5680_s3 + $0x284] ss:$8 sps:$4 sm:$0xff]  }
 0x4b2   :  { %v2032_v18 = vmax.f32 %v1974_v15, 0.0  ;;  %v3710_v35 = vpop.f32.mrb[80].mxu1  ;;  %v4127_v15 = vld [vmem:[%s5680_s3 + $0x280] ss:$8 sps:$4 sm:$0xff]  }
 0x4b3   :  { %v3711_v63 = vpop.f32.mrb[81].mxu1 }
 0x4b4   :  { %v3712_v0 = vadd.f32 %v3711_v63, %v3710_v35  ;;  %v3713_v37 = vpop.f32.mrb[82].mxu1  ;;  %v2052_v42 = vpack.c.bf16 %v2032_v18, %v2031_v19  ;;  %v4128_v19 = vld [vmem:[%s5680_s3 + $0x294] ss:$8 sps:$4 sm:$0xff]   ;;  %v4130_v18 = vld [vmem:[%s5680_s3 + $0x290] ss:$8 sps:$4 sm:$0xff]  }
 0x4b5   :  { %v3714_v16 = vpop.f32.mrb[83].mxu1  ;;  %v4131_v35 = vld [vmem:[%s5680_s3 + $0x2a4] ss:$8 sps:$4 sm:$0xff]   ;;  %v4133_v63 = vld [vmem:[%s5680_s3 + $0x2a0] ss:$8 sps:$4 sm:$0xff]  }
 0x4b6   :  { %v1979_v5 = vadd.f32 %v3712_v0, %v5356_v52  ;;  %v3715_v27 = vadd.f32 %v3714_v16, %v3713_v37  ;;  %3740 = vmatprep.subr.bf16.mxu0 %v2052_v42  ;;  %v4134_v0 = vld [vmem:[%s5680_s3 + $0x2b4] ss:$8 sps:$4 sm:$0xff]   ;;  %v4136_v37 = vld [vmem:[%s5680_s3 + $0x2b0] ss:$8 sps:$4 sm:$0xff]   ;;  %v4137_v42 = vld [vmem:[%s5680_s3 + $0x2c4] ss:$8 sps:$4 sm:$0xff]  }
 0x4b7   :  { %3741 = vmatpush3.bf16.msra.mxu0 %v5368_v23  ;;  %v4139_v16 = vld [vmem:[%s5680_s3 + $0x2c0] ss:$8 sps:$4 sm:$0xff]  }
 0x4b8   :  { %v1982_v55 = vadd.f32 %v3715_v27, %v5360_v9  ;;  %v2033_v38 = vmax.f32 %v1979_v5, 0.0  ;;  %v4140_v5 = vld [vmem:[%s5680_s3 + $0x2d4] ss:$8 sps:$4 sm:$0xff]   ;;  %v4142_v27 = vld [vmem:[%s5680_s3 + $0x2d0] ss:$8 sps:$4 sm:$0xff]  }
 0x4ba   :  { %v2034_v40 = vmax.f32 %v1982_v55, 0.0  ;;  %v3716_v54 = vpop.f32.mrb[84].mxu1  ;;  %v4143_v55 = vld [vmem:[%s5680_s3 + $0x2e4] ss:$8 sps:$4 sm:$0xff]  }
 0x4bb   :  { %v3717_v1 = vpop.f32.mrb[85].mxu1 }
 0x4bc   :  { %v3718_v25 = vadd.f32 %v3717_v1, %v3716_v54  ;;  %v3719_v58 = vpop.f32.mrb[86].mxu1  ;;  %v2053_v57 = vpack.c.bf16 %v2034_v40, %v2033_v38  ;;  %v4145_v38 = vld [vmem:[%s5680_s3 + $0x2e0] ss:$8 sps:$4 sm:$0xff]   ;;  %v4146_v40 = vld [vmem:[%s5680_s3 + $0x2f4] ss:$8 sps:$4 sm:$0xff]   ;;  %v5503_v1 = vpop.permute.xlu0 %2205 }
 0x4bd   :  { %v3720_v24 = vpop.f32.mrb[87].mxu1  ;;  %v4148_v54 = vld [vmem:[%s5680_s3 + $0x2f0] ss:$8 sps:$4 sm:$0xff]  }
 0x4be   :  { %v1987_v31 = vadd.f32 %v3718_v25, %v5364_v33  ;;  %v3721_v34 = vadd.f32 %v3720_v24, %v3719_v58  ;;  %3742 = vmatprep.subr.bf16.mxu0 %v2053_v57  ;;  %v5505_v25 = vpop.permute.xlu1 %2210 }
 0x4bf   :  { %3743 = vmatpush3.bf16.msra.mxu0 %v5372_v46 }
 0x4c0   :  { %v1990_v52 = vadd.f32 %v3721_v34, %v5366_v62  ;;  %v2035_v47 = vmax.f32 %v1987_v31, 0.0  ;;  %v2126_v58 = vpop.permute.xlu0 %2125 }
 0x4c2   :  { %v2036_v23 = vmax.f32 %v1990_v52, 0.0  ;;  %v3722_v49 = vpop.f32.mrb[88].mxu1  ;;  %v2131_v57 = vpop.permute.xlu1 %2130 }
 0x4c3   :  { %v3723_v9 = vpop.f32.mrb[89].mxu1 }
 0x4c4   :  { %v3724_v2 = vadd.f32 %v3723_v9, %v3722_v49  ;;  %v3725_v10 = vpop.f32.mrb[90].mxu1  ;;  %v2054_v8 = vpack.c.bf16 %v2036_v23, %v2035_v47  ;;  %v5507_v24 = vpop.permute.xlu0 %2215 }
 0x4c5   :  { %v3726_v45 = vpop.f32.mrb[91].mxu1 }
 0x4c6   :  { %v1995_v11 = vadd.f32 %v3724_v2, %v5370_v39  ;;  %v3727_v3 = vadd.f32 %v3726_v45, %v3725_v10  ;;  %3744 = vmatprep.subr.bf16.mxu0 %v2054_v8  ;;  %v5509_v31 = vpop.permute.xlu1 %2220 }
 0x4c7   :  { %3745 = vmatpush3.bf16.msra.mxu0 %v5376_v17 }
 0x4c8   :  { %v1998_v33 = vadd.f32 %v3727_v3, %v5374_v29  ;;  %v2037_v43 = vmax.f32 %v1995_v11, 0.0  ;;  %v4101_v29 = vld [vmem:[%s5680_s3 + $0x200] ss:$8 sps:$4 sm:$0xff]   ;;  %v2136_v34 = vpop.permute.xlu0 %2135 }
 0x4ca   :  { %v2038_v46 = vmax.f32 %v1998_v33, 0.0  ;;  %v3728_v59 = vpop.f32.mrb[92].mxu1  ;;  %v2141_v52 = vpop.permute.xlu1 %2140 }
 0x4cb   :  { %v3729_v62 = vpop.f32.mrb[93].mxu1 }
 0x4cc   :  { %v3730_v22 = vadd.f32 %v3729_v62, %v3728_v59  ;;  %v3731_v21 = vpop.f32.mrb[94].mxu1  ;;  %v2055_v53 = vpack.c.bf16 %v2038_v46, %v2037_v43  ;;  %v5511_v47 = vpop.permute.xlu0 %2225  ;;  %v4151_v46 = vld [vmem:[%s5681_s4 + $0x4] ss:$8 sps:$4 sm:$0xff]  }
 0x4cd   :  { %v3732_v60 = vpop.f32.mrb[95].mxu1  ;;  %2877 = vmatprep.mubr.bf16.mxu1 %v4151_v46 }
 0x4ce   :  { %v2003_v44 = vadd.f32 %v3730_v22, %v5378_v61  ;;  %v3733_v50 = vadd.f32 %v3732_v60, %v3731_v21  ;;  %3746 = vmatprep.subr.bf16.mxu0 %v2055_v53  ;;  %v4104_v61 = vld [vmem:[%s5680_s3 + $0x214] ss:$8 sps:$4 sm:$0xff]   ;;  %v5513_v23 = vpop.permute.xlu1 %2230 }
 0x4cf   :  { %3747 = vmatpush3.bf16.msra.mxu0 %v5382_v41  ;;  %v4107_v41 = vld [vmem:[%s5680_s3 + $0x224] ss:$8 sps:$4 sm:$0xff]  }
 0x4d0   :  { %v2006_v39 = vadd.f32 %v3733_v50, %v5380_v14  ;;  %v2039_v51 = vmax.f32 %v2003_v44, 0.0  ;;  %v4106_v14 = vld [vmem:[%s5680_s3 + $0x210] ss:$8 sps:$4 sm:$0xff]   ;;  %v2146_v49 = vpop.permute.xlu0 %2145 }
 0x4d2   :  { %v2040_v17 = vmax.f32 %v2006_v39, 0.0  ;;  %v2151_v2 = vpop.permute.xlu1 %2150 }
 0x4d4   :  { %v2056_v30 = vpack.c.bf16 %v2040_v17, %v2039_v51  ;;  %v5515_v43 = vpop.permute.xlu0 %2235 }
 0x4d6   :  { %3748 = vmatprep.subr.bf16.mxu0 %v2056_v30  ;;  %v5520_v62 = vpop.permute.xlu1 %2240 }
 0x4d7   :  { %3749 = vmatpush3.bf16.msra.mxu0 %v5384_v48  ;;  %v4109_v48 = vld [vmem:[%s5680_s3 + $0x220] ss:$8 sps:$4 sm:$0xff]  }
 0x4d8   :  { %v2156_v51 = vpop.permute.xlu0 %2155 }
 0x4da   :  { %2476 = vmatmul.mubr.bf16.vlgmr.msra.gmra.mrb[80].mxu0 %v4101_v29 }
 0x4db   :  { %2483 = vmatprep.mubr.bf16.mxu0 %v4104_v61  ;;  %v2161_v61 = vpop.permute.xlu1 %2160 }
 0x4e2   :  { %2484 = vmatmul.mubr.bf16.gmra.mrb[84].mxu0 %v4106_v14 }
 0x4e3   :  { %2491 = vmatprep.mubr.bf16.mxu0 %v4107_v41 }
 0x4ea   :  { %2492 = vmatmul.mubr.bf16.gmra.mrb[88].mxu0 %v4109_v48 }
 0x4eb   :  { %2499 = vmatprep.mubr.bf16.mxu0 %v4110_v36 }
 0x4f2   :  { %2500 = vmatmul.mubr.bf16.gmra.mrb[92].mxu0 %v4112_v26  ;;  %v5524_v26 = vpop.permute.xlu0 %2245 }
 0x4f3   :  { %2507 = vmatprep.mubr.bf16.mxu0 %v4113_v56 }
 0x4fa   :  { %2508 = vmatmul.mubr.bf16.gmra.mrb[96].mxu0 %v4115_v28 }
 0x4fb   :  { %2515 = vmatprep.mubr.bf16.mxu0 %v4116_v7 }
 0x502   :  { %2516 = vmatmul.mubr.bf16.gmra.mrb[100].mxu0 %v4118_v32 }
 0x503   :  { %2523 = vmatprep.mubr.bf16.mxu0 %v4119_v13  ;;  %v5528_v13 = vpop.permute.xlu1 %2250 }
 0x50a   :  { %2524 = vmatmul.mubr.bf16.gmra.mrb[104].mxu0 %v4121_v20 }
 0x50b   :  { %2531 = vmatprep.mubr.bf16.mxu0 %v4122_v6 }
 0x512   :  { %2532 = vmatmul.mubr.bf16.gmra.mrb[108].mxu0 %v4124_v12 }
 0x513   :  { %2539 = vmatprep.mubr.bf16.mxu0 %v4125_v4 }
 0x51a   :  { %2540 = vmatmul.mubr.bf16.gmra.mrb[112].mxu0 %v4127_v15  ;;  %v2166_v15 = vpop.permute.xlu0 %2165 }
 0x51b   :  { %2547 = vmatprep.mubr.bf16.mxu0 %v4128_v19 }
 0x522   :  { %2548 = vmatmul.mubr.bf16.gmra.mrb[116].mxu0 %v4130_v18 }
 0x523   :  { %2555 = vmatprep.mubr.bf16.mxu0 %v4131_v35 }
 0x52a   :  { %2556 = vmatmul.mubr.bf16.gmra.mrb[120].mxu0 %v4133_v63  ;;  %v2171_v63 = vpop.permute.xlu1 %2170 }
 0x52b   :  { %2563 = vmatprep.mubr.bf16.mxu0 %v4134_v0 }
 0x532   :  { %2564 = vmatmul.mubr.bf16.gmra.mrb[124].mxu0 %v4136_v37 }
 0x533   :  { %2571 = vmatprep.mubr.bf16.mxu0 %v4137_v42 }
 0x53a   :  { %2572 = vmatmul.mubr.bf16.gmra.mrb[128].mxu0 %v4139_v16 }
 0x53b   :  { %2579 = vmatprep.mubr.bf16.mxu0 %v4140_v5 }
 0x542   :  { %2580 = vmatmul.mubr.bf16.gmra.mrb[132].mxu0 %v4142_v27 }
 0x543   :  { %2587 = vmatprep.mubr.bf16.mxu0 %v4143_v55 }
 0x54a   :  { %2588 = vmatmul.mubr.bf16.gmra.mrb[136].mxu0 %v4145_v38  ;;  %v5532_v38 = vpop.permute.xlu0 %2255 }
 0x54b   :  { %2595 = vmatprep.mubr.bf16.mxu0 %v4146_v40 }
 0x552   :  { %2596 = vmatmul.mubr.bf16.gmra.mrb[140].mxu0 %v4148_v54  ;;  %v5534_v54 = vpop.permute.xlu1 %2260 }
 0x5ad   :  { %v3750_v9 = vpop.f32.mrb[80].mxu0 }
 0x5ae   :  { %v3751_v10 = vpop.f32.mrb[81].mxu0 }
 0x5af   :  { %v3752_v8 = vadd.f32 %v3751_v10, %v3750_v9  ;;  %v3753_v45 = vpop.f32.mrb[82].mxu0  ;;  %v2176_v10 = vpop.permute.xlu0 %2175 }
 0x5b0   :  { %v3754_v11 = vpop.f32.mrb[83].mxu0 }
 0x5b1   :  { %v2478_v3 = vadd.f32 %v3752_v8, %v2126_v58  ;;  %v3755_v33 = vadd.f32 %v3754_v11, %v3753_v45 }
 0x5b3   :  { %v2481_v59 = vadd.f32 %v3755_v33, %v2131_v57  ;;  %v2604_v22 = vmax.f32 %v2478_v3, 0.0  ;;  %v2181_v3 = vpop.permute.xlu1 %2180 }
 0x5b5   :  { %v2605_v21 = vmax.f32 %v2481_v59, 0.0  ;;  %v3756_v53 = vpop.f32.mrb[84].mxu0 }
 0x5b6   :  { %v3757_v60 = vpop.f32.mrb[85].mxu0 }
 0x5b7   :  { %v5522_v44 = vpack.c.bf16 %v2605_v21, %v2604_v22  ;;  %v3758_v50 = vadd.f32 %v3757_v60, %v3756_v53  ;;  %v3759_v39 = vpop.f32.mrb[86].mxu0  ;;  %v5538_v21 = vpop.permute.xlu0 %2265 }
 0x5b8   :  { %v3760_v17 = vpop.f32.mrb[87].mxu0 }
 0x5b9   :  { %v2486_v30 = vadd.f32 %v3758_v50, %v2136_v34  ;;  %v3761_v29 = vadd.f32 %v3760_v17, %v3759_v39 }
 0x5bb   :  { %v2489_v14 = vadd.f32 %v3761_v29, %v2141_v52  ;;  %v2606_v41 = vmax.f32 %v2486_v30, 0.0 }
 0x5bd   :  { %v2607_v48 = vmax.f32 %v2489_v14, 0.0  ;;  %v3762_v36 = vpop.f32.mrb[88].mxu0  ;;  %v2186_v14 = vpop.permute.xlu0 %2185 }
 0x5be   :  { %v3763_v56 = vpop.f32.mrb[89].mxu0 }
 0x5bf   :  { %v5526_v28 = vpack.c.bf16 %v2607_v48, %v2606_v41  ;;  %v3764_v7 = vadd.f32 %v3763_v56, %v3762_v36  ;;  %v3765_v32 = vpop.f32.mrb[90].mxu0 }
 0x5c0   :  { %v3766_v20 = vpop.f32.mrb[91].mxu0 }
 0x5c1   :  { %v2494_v6 = vadd.f32 %v3764_v7, %v2146_v49  ;;  %v3767_v12 = vadd.f32 %v3766_v20, %v3765_v32 }
 0x5c3   :  { %v2497_v4 = vadd.f32 %v3767_v12, %v2151_v2  ;;  %v2608_v19 = vmax.f32 %v2494_v6, 0.0 }
 0x5c5   :  { %v2609_v18 = vmax.f32 %v2497_v4, 0.0  ;;  %v3768_v35 = vpop.f32.mrb[92].mxu0 }
 0x5c6   :  { %v3769_v0 = vpop.f32.mrb[93].mxu0 }
 0x5c7   :  { %v5530_v37 = vpack.c.bf16 %v2609_v18, %v2608_v19  ;;  %v3770_v42 = vadd.f32 %v3769_v0, %v3768_v35  ;;  %v3771_v16 = vpop.f32.mrb[94].mxu0  ;;  %v5546_v19 = vpop.permute.xlu0 %2275 }
 0x5c8   :  { %v3772_v5 = vpop.f32.mrb[95].mxu0 }
 0x5c9   :  { %v2502_v27 = vadd.f32 %v3770_v42, %v2156_v51  ;;  %v3773_v55 = vadd.f32 %v3772_v5, %v3771_v16  ;;  %v5542_v51 = vpop.permute.xlu1 %2270 }
 0x5cb   :  { %v2505_v40 = vadd.f32 %v3773_v55, %v2161_v61  ;;  %v2610_v58 = vmax.f32 %v2502_v27, 0.0 }
 0x5cd   :  { %v2611_v57 = vmax.f32 %v2505_v40, 0.0  ;;  %v3774_v34 = vpop.f32.mrb[96].mxu0  ;;  %v2191_v56 = vpop.permute.xlu1 %2190 }
 0x5ce   :  { %v3775_v52 = vpop.f32.mrb[97].mxu0  ;;  %v2196_v40 = vpop.permute.xlu0 %2195 }
 0x5cf   :  { %v5536_v49 = vpack.c.bf16 %v2611_v57, %v2610_v58  ;;  %v3776_v9 = vadd.f32 %v3775_v52, %v3774_v34  ;;  %v3777_v2 = vpop.f32.mrb[98].mxu0 }
 0x5d0   :  { %v3778_v8 = vpop.f32.mrb[99].mxu0 }
 0x5d1   :  { %v2510_v45 = vadd.f32 %v3776_v9, %v2166_v15  ;;  %v3779_v11 = vadd.f32 %v3778_v8, %v3777_v2  ;;  %v5548_v35 = vpop.permute.xlu1 %2280 }
 0x5d3   :  { %v2513_v33 = vadd.f32 %v3779_v11, %v2171_v63  ;;  %v2612_v46 = vmax.f32 %v2510_v45, 0.0 }
 0x5d5   :  { %v2613_v59 = vmax.f32 %v2513_v33, 0.0  ;;  %v3780_v22 = vpop.f32.mrb[100].mxu0  ;;  %v2201_v52 = vpop.permute.xlu1 %2200 }
 0x5d6   :  { %v3781_v53 = vpop.f32.mrb[101].mxu0 }
 0x5d7   :  { %v5540_v60 = vpack.c.bf16 %v2613_v59, %v2612_v46  ;;  %v3782_v50 = vadd.f32 %v3781_v53, %v3780_v22  ;;  %v3783_v39 = vpop.f32.mrb[102].mxu0 }
 0x5d8   :  { %v3784_v17 = vpop.f32.mrb[103].mxu0 }
 0x5d9   :  { %v2518_v30 = vadd.f32 %v3782_v50, %v2176_v10  ;;  %v3785_v29 = vadd.f32 %v3784_v17, %v3783_v39 }
 0x5db   :  { %v2521_v61 = vadd.f32 %v3785_v29, %v2181_v3  ;;  %v2614_v41 = vmax.f32 %v2518_v30, 0.0 }
 0x5dd   :  { %v2615_v48 = vmax.f32 %v2521_v61, 0.0  ;;  %v3786_v36 = vpop.f32.mrb[104].mxu0 }
 0x5de   :  { %v3787_v7 = vpop.f32.mrb[105].mxu0 }
 0x5df   :  { %v5544_v32 = vpack.c.bf16 %v2615_v48, %v2614_v41  ;;  %v3788_v20 = vadd.f32 %v3787_v7, %v3786_v36  ;;  %v3789_v6 = vpop.f32.mrb[106].mxu0 }
 0x5e0   :  { %v3790_v12 = vpop.f32.mrb[107].mxu0 }
 0x5e1   :  { %v2526_v4 = vadd.f32 %v3788_v20, %v2186_v14  ;;  %v3791_v15 = vadd.f32 %v3790_v12, %v3789_v6 }
 0x5e3   :  { %v2529_v18 = vadd.f32 %v3791_v15, %v2191_v56  ;;  %v2616_v63 = vmax.f32 %v2526_v4, 0.0 }
 0x5e5   :  { %v2617_v0 = vmax.f32 %v2529_v18, 0.0  ;;  %v3792_v42 = vpop.f32.mrb[108].mxu0 }
 0x5e6   :  { %v3793_v16 = vpop.f32.mrb[109].mxu0 }
 0x5e7   :  { %v5550_v5 = vpack.c.bf16 %v2617_v0, %v2616_v63  ;;  %v3794_v27 = vadd.f32 %v3793_v16, %v3792_v42  ;;  %v3795_v55 = vpop.f32.mrb[110].mxu0 }
 0x5e8   :  { %v3796_v58 = vpop.f32.mrb[111].mxu0 }
 0x5e9   :  { %v2534_v57 = vadd.f32 %v3794_v27, %v2196_v40  ;;  %v3797_v34 = vadd.f32 %v3796_v58, %v3795_v55 }
 0x5eb   :  { %v2537_v9 = vadd.f32 %v3797_v34, %v2201_v52  ;;  %v2618_v2 = vmax.f32 %v2534_v57, 0.0 }
 0x5ed   :  { %v2619_v10 = vmax.f32 %v2537_v9, 0.0  ;;  %v3798_v8 = vpop.f32.mrb[112].mxu0 }
 0x5ee   :  { %v3799_v45 = vpop.f32.mrb[113].mxu0 }
 0x5ef   :  { %v5552_v11 = vpack.c.bf16 %v2619_v10, %v2618_v2  ;;  %v3800_v3 = vadd.f32 %v3799_v45, %v3798_v8  ;;  %v3801_v33 = vpop.f32.mrb[114].mxu0 }
 0x5f0   :  { %v3802_v46 = vpop.f32.mrb[115].mxu0 }
 0x5f1   :  { %v2542_v59 = vadd.f32 %v3800_v3, %v5503_v1  ;;  %v3803_v22 = vadd.f32 %v3802_v46, %v3801_v33 }
 0x5f3   :  { %v2545_v53 = vadd.f32 %v3803_v22, %v5505_v25  ;;  %v2620_v50 = vmax.f32 %v2542_v59, 0.0 }
 0x5f5   :  { %v2621_v39 = vmax.f32 %v2545_v53, 0.0  ;;  %v3804_v17 = vpop.f32.mrb[116].mxu0 }
 0x5f6   :  { %v3805_v30 = vpop.f32.mrb[117].mxu0 }
 0x5f7   :  { %v3806_v29 = vadd.f32 %v3805_v30, %v3804_v17  ;;  %v3807_v61 = vpop.f32.mrb[118].mxu0  ;;  %v2644_v14 = vpack.c.bf16 %v2621_v39, %v2620_v50 }
 0x5f8   :  { %v3808_v41 = vpop.f32.mrb[119].mxu0 }
 0x5f9   :  { %v2550_v48 = vadd.f32 %v3806_v29, %v5507_v24  ;;  %v3809_v36 = vadd.f32 %v3808_v41, %v3807_v61  ;;  %3846 = vmatprep.subr.bf16.mxu1 %v2644_v14 }
 0x5fa   :  { %3847 = vmatpush3.bf16.msra.mxu1 %v5522_v44 }
 0x5fb   :  { %v2553_v56 = vadd.f32 %v3809_v36, %v5509_v31  ;;  %v2622_v1 = vmax.f32 %v2550_v48, 0.0 }
 0x5fd   :  { %v2623_v7 = vmax.f32 %v2553_v56, 0.0  ;;  %v3810_v20 = vpop.f32.mrb[120].mxu0 }
 0x5fe   :  { %v3811_v25 = vpop.f32.mrb[121].mxu0 }
 0x5ff   :  { %v3812_v6 = vadd.f32 %v3811_v25, %v3810_v20  ;;  %v3813_v12 = vpop.f32.mrb[122].mxu0  ;;  %v2645_v4 = vpack.c.bf16 %v2623_v7, %v2622_v1 }
 0x600   :  { %v3814_v15 = vpop.f32.mrb[123].mxu0 }
 0x601   :  { %v2558_v18 = vadd.f32 %v3812_v6, %v5511_v47  ;;  %v3815_v63 = vadd.f32 %v3814_v15, %v3813_v12  ;;  %3848 = vmatprep.subr.bf16.mxu1 %v2645_v4 }
 0x602   :  { %3849 = vmatpush3.bf16.msra.mxu1 %v5526_v28 }
 0x603   :  { %v2561_v24 = vadd.f32 %v3815_v63, %v5513_v23  ;;  %v2624_v0 = vmax.f32 %v2558_v18, 0.0 }
 0x605   :  { %v2625_v44 = vmax.f32 %v2561_v24, 0.0  ;;  %v3816_v42 = vpop.f32.mrb[124].mxu0  ;;  %v4158_v24 = vld [vmem:[%s5681_s4 + $0x34] ss:$8 sps:$4 sm:$0xff]  }
 0x606   :  { %v3817_v31 = vpop.f32.mrb[125].mxu0 }
 0x607   :  { %v3818_v16 = vadd.f32 %v3817_v31, %v3816_v42  ;;  %v3819_v27 = vpop.f32.mrb[126].mxu0  ;;  %v2646_v55 = vpack.c.bf16 %v2625_v44, %v2624_v0  ;;  %v4160_v0 = vld [vmem:[%s5681_s4 + $0x30] ss:$8 sps:$4 sm:$0xff]   ;;  %v4161_v44 = vld [vmem:[%s5681_s4 + $0x44] ss:$8 sps:$4 sm:$0xff]  }
 0x608   :  { %v3820_v40 = vpop.f32.mrb[127].mxu0  ;;  %v4163_v42 = vld [vmem:[%s5681_s4 + $0x40] ss:$8 sps:$4 sm:$0xff]   ;;  %v4164_v31 = vld [vmem:[%s5681_s4 + $0x54] ss:$8 sps:$4 sm:$0xff]  }
 0x609   :  { %v2566_v58 = vadd.f32 %v3818_v16, %v5515_v43  ;;  %v3821_v57 = vadd.f32 %v3820_v40, %v3819_v27  ;;  %3850 = vmatprep.subr.bf16.mxu1 %v2646_v55  ;;  %v4166_v16 = vld [vmem:[%s5681_s4 + $0x50] ss:$8 sps:$4 sm:$0xff]   ;;  %v4167_v27 = vld [vmem:[%s5681_s4 + $0x64] ss:$8 sps:$4 sm:$0xff]   ;;  %v4169_v55 = vld [vmem:[%s5681_s4 + $0x60] ss:$8 sps:$4 sm:$0xff]  }
 0x60a   :  { %3851 = vmatpush3.bf16.msra.mxu1 %v5530_v37  ;;  %v4170_v40 = vld [vmem:[%s5681_s4 + $0x74] ss:$8 sps:$4 sm:$0xff]  }
 0x60b   :  { %v2569_v47 = vadd.f32 %v3821_v57, %v5520_v62  ;;  %v2626_v34 = vmax.f32 %v2566_v58, 0.0  ;;  %v4172_v58 = vld [vmem:[%s5681_s4 + $0x70] ss:$8 sps:$4 sm:$0xff]   ;;  %v2693_v57 = vpop.permute.xlu1 %2692 }
 0x60d   :  { %v2627_v28 = vmax.f32 %v2569_v47, 0.0  ;;  %v3822_v52 = vpop.f32.mrb[128].mxu0 }
 0x60e   :  { %v3823_v23 = vpop.f32.mrb[129].mxu0 }
 0x60f   :  { %v3824_v9 = vadd.f32 %v3823_v23, %v3822_v52  ;;  %v3825_v2 = vpop.f32.mrb[130].mxu0  ;;  %v2647_v10 = vpack.c.bf16 %v2627_v28, %v2626_v34  ;;  %v2703_v47 = vpop.permute.xlu1 %2702 }
 0x610   :  { %v3826_v8 = vpop.f32.mrb[131].mxu0  ;;  %v2688_v34 = vpop.permute.xlu0 %2687 }
 0x611   :  { %v2574_v45 = vadd.f32 %v3824_v9, %v5524_v26  ;;  %v3827_v3 = vadd.f32 %v3826_v8, %v3825_v2  ;;  %3852 = vmatprep.subr.bf16.mxu1 %v2647_v10 }
 0x612   :  { %3853 = vmatpush3.bf16.msra.mxu1 %v5536_v49 }
 0x613   :  { %v2577_v43 = vadd.f32 %v3827_v3, %v5528_v13  ;;  %v2628_v33 = vmax.f32 %v2574_v45, 0.0  ;;  %v2713_v28 = vpop.permute.xlu1 %2712 }
 0x614   :  { %v2698_v52 = vpop.permute.xlu0 %2697 }
 0x615   :  { %v2629_v37 = vmax.f32 %v2577_v43, 0.0  ;;  %v3828_v46 = vpop.f32.mrb[132].mxu0 }
 0x616   :  { %v3829_v62 = vpop.f32.mrb[133].mxu0 }
 0x617   :  { %v3830_v59 = vadd.f32 %v3829_v62, %v3828_v46  ;;  %v3831_v22 = vpop.f32.mrb[134].mxu0  ;;  %v2648_v53 = vpack.c.bf16 %v2629_v37, %v2628_v33  ;;  %v5623_v23 = vpop.permute.xlu1 %2722 }
 0x618   :  { %v3832_v50 = vpop.f32.mrb[135].mxu0  ;;  %v2708_v9 = vpop.permute.xlu0 %2707 }
 0x619   :  { %v2582_v39 = vadd.f32 %v3830_v59, %v5532_v38  ;;  %v3833_v17 = vadd.f32 %v3832_v50, %v3831_v22  ;;  %3854 = vmatprep.subr.bf16.mxu1 %v2648_v53 }
 0x61a   :  { %3855 = vmatpush3.bf16.msra.mxu1 %v5540_v60 }
 0x61b   :  { %v2585_v26 = vadd.f32 %v3833_v17, %v5534_v54  ;;  %v2630_v30 = vmax.f32 %v2582_v39, 0.0  ;;  %v5625_v2 = vpop.permute.xlu1 %2732 }
 0x61c   :  { %v5627_v10 = vpop.permute.xlu0 %2717 }
 0x61d   :  { %v2631_v49 = vmax.f32 %v2585_v26, 0.0  ;;  %v3834_v29 = vpop.f32.mrb[136].mxu0 }
 0x61e   :  { %v3835_v13 = vpop.f32.mrb[137].mxu0 }
 0x61f   :  { %v3836_v61 = vadd.f32 %v3835_v13, %v3834_v29  ;;  %v3837_v14 = vpop.f32.mrb[138].mxu0  ;;  %v2649_v41 = vpack.c.bf16 %v2631_v49, %v2630_v30  ;;  %v5629_v8 = vpop.permute.xlu1 %2752 }
 0x620   :  { %v3838_v48 = vpop.f32.mrb[139].mxu0  ;;  %v5631_v45 = vpop.permute.xlu0 %2727 }
 0x621   :  { %v2590_v36 = vadd.f32 %v3836_v61, %v5538_v21  ;;  %v3839_v56 = vadd.f32 %v3838_v48, %v3837_v14  ;;  %3856 = vmatprep.subr.bf16.mxu1 %v2649_v41 }
 0x622   :  { %3857 = vmatpush3.bf16.msra.mxu1 %v5544_v32 }
 0x623   :  { %v2593_v38 = vadd.f32 %v3839_v56, %v5542_v51  ;;  %v2632_v1 = vmax.f32 %v2590_v36, 0.0  ;;  %v4149_v51 = vld [vmem:[%s5681_s4] ss:$8 sps:$4 sm:$0xff]   ;;  %v5633_v3 = vpop.permute.xlu1 %2757 }
 0x624   :  { %v5635_v43 = vpop.permute.xlu0 %2747 }
 0x625   :  { %v2633_v60 = vmax.f32 %v2593_v38, 0.0  ;;  %v3840_v7 = vpop.f32.mrb[140].mxu0 }
 0x626   :  { %v3841_v54 = vpop.f32.mrb[141].mxu0 }
 0x627   :  { %v3842_v20 = vadd.f32 %v3841_v54, %v3840_v7  ;;  %v3843_v25 = vpop.f32.mrb[142].mxu0  ;;  %v2650_v6 = vpack.c.bf16 %v2633_v60, %v2632_v1  ;;  %v2983_v33 = vpop.permute.xlu1 %2982 }
 0x628   :  { %v3844_v12 = vpop.f32.mrb[143].mxu0  ;;  %v5637_v37 = vpop.permute.xlu0 %2737 }
 0x629   :  { %v2598_v4 = vadd.f32 %v3842_v20, %v5546_v19  ;;  %v3845_v15 = vadd.f32 %v3844_v12, %v3843_v25  ;;  %3858 = vmatprep.subr.bf16.mxu1 %v2650_v6  ;;  %v4152_v19 = vld [vmem:[%s5681_s4 + $0x14] ss:$8 sps:$4 sm:$0xff]  }
 0x62a   :  { %3859 = vmatpush3.bf16.msra.mxu1 %v5550_v5  ;;  %v4155_v5 = vld [vmem:[%s5681_s4 + $0x24] ss:$8 sps:$4 sm:$0xff]  }
 0x62b   :  { %v2601_v21 = vadd.f32 %v3845_v15, %v5548_v35  ;;  %v2634_v18 = vmax.f32 %v2598_v4, 0.0  ;;  %v4154_v35 = vld [vmem:[%s5681_s4 + $0x10] ss:$8 sps:$4 sm:$0xff]   ;;  %v3003_v46 = vpop.permute.xlu1 %3002 }
 0x62c   :  { %v2978_v62 = vpop.permute.xlu0 %2977 }
 0x62d   :  { %v2635_v32 = vmax.f32 %v2601_v21, 0.0 }
 0x62f   :  { %v2651_v63 = vpack.c.bf16 %v2635_v32, %v2634_v18  ;;  %v5639_v59 = vpop.permute.xlu1 %3017 }
 0x630   :  { %v2998_v22 = vpop.permute.xlu0 %2997 }
 0x631   :  { %3860 = vmatprep.subr.bf16.mxu1 %v2651_v63 }
 0x632   :  { %3861 = vmatpush3.bf16.msra.mxu1 %v5552_v11  ;;  %v4157_v11 = vld [vmem:[%s5681_s4 + $0x20] ss:$8 sps:$4 sm:$0xff]   ;;  %s4198_s4 = smov [#allocation3]  }
 0x633   :  { %v5641_v53 = vpop.permute.xlu1 %2762  ;;  %s3131_s26 = sshll.u32 %s4198_s4, 4  ;;  %s3132_s26 = int_to_ptr.vmem [resolvable:$true] %s3131_s26 }
 0x634   :  { %v5643_v30 = vpop.permute.xlu0 %2742  ;;  %s4173_s27 = scalar_lea.vmem %s3132_s26, 64  ;;  %p4178_p1 = scmp.lt.s32.totalorder %s3132_s26, %s3132_s26 }
 0x635   :  { %2878 = vmatmul.mubr.bf16.vlgmr.msra.gmra.mrb[96].mxu1 %v4149_v51  ;;  %p4174_p0 = scmp.ne.s32.totalorder %s3132_s26, %s4173_s27  ;;  %p4179_p2 = scmp.lt.s32.totalorder %s4173_s27, %s4173_s27 }
 0x636   :  { %2885 = vmatprep.mubr.bf16.mxu1 %v4152_v19 }
 0x637   :  { %v3008_v61 = vpop.permute.xlu1 %3007  ;;  %p4180_p3 = por %p4179_p2, %p4178_p1 }
 0x638   :  { %v5645_v56 = vpop.permute.xlu0 %3022 }
 0x639   :  { %p4181_p4 = pnand %p4180_p3, %p4174_p0 }
 0x63b   :  { %v5647_v20 = vpop.permute.xlu1 %3042 }
 0x63c   :  { %v2988_v18 = vpop.permute.xlu0 %2987 }
 0x63d   :  { %2886 = vmatmul.mubr.bf16.gmra.mrb[100].mxu1 %v4154_v35 }
 0x63e   :  { %2893 = vmatprep.mubr.bf16.mxu1 %v4155_v5 }
 0x63f   :  { %v2993_v19 = vpop.permute.xlu1 %2992 }
 0x645   :  { %2894 = vmatmul.mubr.bf16.gmra.mrb[104].mxu1 %v4157_v11 }
 0x646   :  { %2901 = vmatprep.mubr.bf16.mxu1 %v4158_v24 }
 0x64d   :  { %2902 = vmatmul.mubr.bf16.gmra.mrb[108].mxu1 %v4160_v0 }
 0x64e   :  { %2909 = vmatprep.mubr.bf16.mxu1 %v4161_v44 }
 0x655   :  { %2910 = vmatmul.mubr.bf16.gmra.mrb[112].mxu1 %v4163_v42 }
 0x656   :  { %2917 = vmatprep.mubr.bf16.mxu1 %v4164_v31 }
 0x65d   :  { %2918 = vmatmul.mubr.bf16.gmra.mrb[116].mxu1 %v4166_v16 }
 0x65e   :  { %2925 = vmatprep.mubr.bf16.mxu1 %v4167_v27  ;;  %v5649_v27 = vpop.permute.xlu0 %3037 }
 0x665   :  { %2926 = vmatmul.mubr.bf16.gmra.mrb[120].mxu1 %v4169_v55 }
 0x666   :  { %2933 = vmatprep.mubr.bf16.mxu1 %v4170_v40 }
 0x66d   :  { %2934 = vmatmul.mubr.bf16.gmra.mrb[124].mxu1 %v4172_v58 }
 0x708   :  { %v3862_v50 = vpop.f32.mrb[96].mxu1 }
 0x709   :  { %v3863_v39 = vpop.f32.mrb[97].mxu1 }
 0x70a   :  { %v3864_v17 = vadd.f32 %v3863_v39, %v3862_v50  ;;  %v3865_v26 = vpop.f32.mrb[98].mxu1  ;;  %v3028_v50 = vpop.permute.xlu0 %3027 }
 0x70b   :  { %v3866_v49 = vpop.f32.mrb[99].mxu1 }
 0x70c   :  { %v2880_v29 = vadd.f32 %v3864_v17, %v2688_v34  ;;  %v3867_v13 = vadd.f32 %v3866_v49, %v3865_v26 }
 0x70e   :  { %v2942_v14 = vmax.f32 %v2880_v29, 0.0  ;;  %v2883_v41 = vadd.f32 %v3867_v13, %v2693_v57 }
 0x710   :  { %v2943_v48 = vmax.f32 %v2883_v41, 0.0  ;;  %v3868_v36 = vpop.f32.mrb[100].mxu1  ;;  %v3055_v1 = vmul.f32 %v2978_v62, %v2942_v14 }
 0x711   :  { %v3869_v38 = vpop.f32.mrb[101].mxu1 }
 0x712   :  { %v3056_v60 = vmul.f32 %v2983_v33, %v2943_v48  ;;  %v3870_v7 = vadd.f32 %v3869_v38, %v3868_v36  ;;  %v3871_v54 = vpop.f32.mrb[102].mxu1  ;;  %v3013_v36 = vpop.permute.xlu0 %3012 }
 0x713   :  { %v3872_v25 = vpop.f32.mrb[103].mxu1 }
 0x714   :  { %v3071_v6 = vadd.f32 %v3056_v60, %v3055_v1  ;;  %v2888_v12 = vadd.f32 %v3870_v7, %v2698_v52  ;;  %v3873_v4 = vadd.f32 %v3872_v25, %v3871_v54 }
 0x716   :  { %v2944_v15 = vmax.f32 %v2888_v12, 0.0  ;;  %v2891_v21 = vadd.f32 %v3873_v4, %v2703_v47 }
 0x718   :  { %v3057_v32 = vmul.f32 %v2988_v18, %v2944_v15  ;;  %v2945_v63 = vmax.f32 %v2891_v21, 0.0  ;;  %v3874_v51 = vpop.f32.mrb[104].mxu1 }
 0x719   :  { %v3875_v35 = vpop.f32.mrb[105].mxu1 }
 0x71a   :  { %v3072_v5 = vadd.f32 %v3071_v6, %v3057_v32  ;;  %v3058_v11 = vmul.f32 %v2993_v19, %v2945_v63  ;;  %v3876_v24 = vadd.f32 %v3875_v35, %v3874_v51  ;;  %v3877_v0 = vpop.f32.mrb[106].mxu1 }
 0x71b   :  { %v3878_v44 = vpop.f32.mrb[107].mxu1 }
 0x71c   :  { %v3073_v42 = vadd.f32 %v3072_v5, %v3058_v11  ;;  %v2896_v31 = vadd.f32 %v3876_v24, %v2708_v9  ;;  %v3879_v16 = vadd.f32 %v3878_v44, %v3877_v0 }
 0x71e   :  { %v2946_v55 = vmax.f32 %v2896_v31, 0.0  ;;  %v2899_v40 = vadd.f32 %v3879_v16, %v2713_v28  ;;  %v3074_v39 = vrot.slane %v3073_v42, 4 }
 0x720   :  { %v2947_v58 = vmax.f32 %v2899_v40, 0.0  ;;  %v3880_v57 = vpop.f32.mrb[108].mxu1  ;;  %v3059_v34 = vmul.f32 %v2998_v22, %v2946_v55  ;;  %v3075_v14 = vadd.f32 %v3074_v39, %v3073_v42 }
 0x721   :  { %v3881_v47 = vpop.f32.mrb[109].mxu1 }
 0x722   :  { %v3060_v52 = vmul.f32 %v3003_v46, %v2947_v58  ;;  %v3882_v33 = vadd.f32 %v3881_v47, %v3880_v57  ;;  %v3883_v62 = vpop.f32.mrb[110].mxu1  ;;  %v3076_v7 = vrot.slane %v3075_v14, 2 }
 0x723   :  { %v3884_v17 = vpop.f32.mrb[111].mxu1 }
 0x724   :  { %v3080_v26 = vadd.f32 %v3060_v52, %v3059_v34  ;;  %v2904_v49 = vadd.f32 %v3882_v33, %v5627_v10  ;;  %v3885_v29 = vadd.f32 %v3884_v17, %v3883_v62  ;;  %v3077_v15 = vadd.f32 %v3076_v7, %v3075_v14 }
 0x726   :  { %v2948_v9 = vmax.f32 %v2904_v49, 0.0  ;;  %v2907_v13 = vadd.f32 %v3885_v29, %v5623_v23  ;;  %v3078_v11 = vrot.slane %v3077_v15, 1 }
 0x728   :  { %v3061_v41 = vmul.f32 %v3008_v61, %v2948_v9  ;;  %v2949_v28 = vmax.f32 %v2907_v13, 0.0  ;;  %v3886_v48 = vpop.f32.mrb[112].mxu1 }
 0x729   :  { %v3887_v38 = vpop.f32.mrb[113].mxu1 }
 0x72a   :  { %v3081_v22 = vadd.f32 %v3080_v26, %v3061_v41  ;;  %v3062_v46 = vmul.f32 %v3013_v36, %v2949_v28  ;;  %v3888_v1 = vadd.f32 %v3887_v38, %v3886_v48  ;;  %v3889_v60 = vpop.f32.mrb[114].mxu1 }
 0x72b   :  { %v3890_v54 = vpop.f32.mrb[115].mxu1 }
 0x72c   :  { %v3082_v25 = vadd.f32 %v3081_v22, %v3062_v46  ;;  %v2912_v6 = vadd.f32 %v3888_v1, %v5631_v45  ;;  %v3891_v10 = vadd.f32 %v3890_v54, %v3889_v60  ;;  %v3048_v46 = vpop.permute.xlu1 %3047 }
 0x72e   :  { %v3083_v12 = vrot.slane %v3082_v25, 4  ;;  %v2950_v4 = vmax.f32 %v2912_v6, 0.0  ;;  %v2915_v23 = vadd.f32 %v3891_v10, %v5625_v2 }
 0x730   :  { %v3084_v61 = vadd.f32 %v3083_v12, %v3082_v25  ;;  %v2951_v21 = vmax.f32 %v2915_v23, 0.0  ;;  %v3892_v18 = vpop.f32.mrb[116].mxu1  ;;  %v3063_v51 = vmul.f32 %v5639_v59, %v2950_v4  ;;  %v3079_v59 = vadd.f32 %v3078_v11, %v3077_v15 }
 0x731   :  { %v3893_v32 = vpop.f32.mrb[117].mxu1 }
 0x732   :  { %v3085_v63 = vrot.slane %v3084_v61, 2  ;;  %v3064_v19 = vmul.f32 %v5645_v56, %v2951_v21  ;;  %v3894_v35 = vadd.f32 %v3893_v32, %v3892_v18  ;;  %v3895_v5 = vpop.f32.mrb[118].mxu1  ;;  %v3033_v56 = vpop.permute.xlu0 %3032 }
 0x733   :  { %v3896_v24 = vpop.f32.mrb[119].mxu1 }
 0x734   :  { %v3086_v45 = vadd.f32 %v3085_v63, %v3084_v61  ;;  %v3089_v0 = vadd.f32 %v3064_v19, %v3063_v51  ;;  %v2920_v44 = vadd.f32 %v3894_v35, %v5637_v37  ;;  %v3897_v42 = vadd.f32 %v3896_v24, %v3895_v5 }
 0x736   :  { %v3087_v2 = vrot.slane %v3086_v45, 1  ;;  %v2952_v31 = vmax.f32 %v2920_v44, 0.0  ;;  %v2923_v16 = vadd.f32 %v3897_v42, %v5643_v30 }
 0x738   :  { %v3065_v55 = vmul.f32 %v3028_v50, %v2952_v31  ;;  %v2953_v40 = vmax.f32 %v2923_v16, 0.0  ;;  %v3898_v58 = vpop.f32.mrb[120].mxu1  ;;  %v3088_v57 = vadd.f32 %v3087_v2, %v3086_v45 }
 0x739   :  { %v3899_v47 = vpop.f32.mrb[121].mxu1 }
 0x73a   :  { %v3090_v34 = vadd.f32 %v3089_v0, %v3065_v55  ;;  %v3066_v52 = vmul.f32 %v3033_v56, %v2953_v40  ;;  %v3900_v33 = vadd.f32 %v3899_v47, %v3898_v58  ;;  %v3901_v62 = vpop.f32.mrb[122].mxu1  ;;  %v3108_v39 = vsel %vm3107_vm1, %v3079_v59, %v3088_v57 }
 0x73b   :  { %v3902_v17 = vpop.f32.mrb[123].mxu1 }
 0x73c   :  { %v3091_v37 = vadd.f32 %v3090_v34, %v3066_v52  ;;  %v2928_v26 = vadd.f32 %v3900_v33, %v5635_v43  ;;  %v3903_v49 = vadd.f32 %v3902_v17, %v3901_v62 }
 0x73e   :  { %v3092_v29 = vrot.slane %v3091_v37, 4  ;;  %v2954_v30 = vmax.f32 %v2928_v26, 0.0  ;;  %v2931_v50 = vadd.f32 %v3903_v49, %v5629_v8 }
 0x740   :  { %v3093_v9 = vadd.f32 %v3092_v29, %v3091_v37  ;;  %v2955_v13 = vmax.f32 %v2931_v50, 0.0  ;;  %v3904_v14 = vpop.f32.mrb[124].mxu1  ;;  %v3067_v48 = vmul.f32 %v5649_v27, %v2954_v30  ;;  %v3053_v27 = vpop.permute.xlu1 %3052 }
 0x741   :  { %v3905_v41 = vpop.f32.mrb[125].mxu1 }
 0x742   :  { %v3094_v28 = vrot.slane %v3093_v9, 2  ;;  %v3068_v36 = vmul.f32 %v5647_v20, %v2955_v13  ;;  %v3906_v38 = vadd.f32 %v3905_v41, %v3904_v14  ;;  %v3907_v22 = vpop.f32.mrb[126].mxu1 }
 0x743   :  { %v3908_v1 = vpop.f32.mrb[127].mxu1 }
 0x744   :  { %v3095_v60 = vadd.f32 %v3094_v28, %v3093_v9  ;;  %v3098_v43 = vadd.f32 %v3068_v36, %v3067_v48  ;;  %v2936_v7 = vadd.f32 %v3906_v38, %v5633_v3  ;;  %v3909_v54 = vadd.f32 %v3908_v1, %v3907_v22 }
 0x746   :  { %v2956_v25 = vmax.f32 %v2936_v7, 0.0  ;;  %v2939_v8 = vadd.f32 %v3909_v54, %v5641_v53  ;;  %v3096_v6 = vrot.slane %v3095_v60, 1  ;;  %v3121_v53 = vpop.permute.xlu0 %3120 }
 0x748   :  { %v3069_v10 = vmul.f32 %v3048_v46, %v2956_v25  ;;  %v2957_v12 = vmax.f32 %v2939_v8, 0.0  ;;  %v3097_v4 = vadd.f32 %v3096_v6, %v3095_v60 }
 0x74a   :  { %v3099_v23 = vadd.f32 %v3098_v43, %v3069_v10  ;;  %v3070_v20 = vmul.f32 %v3053_v27, %v2957_v12  ;;  %v3110_v15 = vsel %vm3109_vm2, %v3108_v39, %v3097_v4 }
 0x74c   :  { %v3100_v61 = vadd.f32 %v3099_v23, %v3070_v20 }
 0x74e   :  { %v3101_v21 = vrot.slane %v3100_v61, 4 }
 0x750   :  { %v3102_v18 = vadd.f32 %v3101_v21, %v3100_v61 }
 0x752   :  { %v3103_v32 = vrot.slane %v3102_v18, 2 }
 0x754   :  { %v3104_v63 = vadd.f32 %v3103_v32, %v3102_v18 }
 0x756   :  { %v3105_v51 = vrot.slane %v3104_v63, 1 }
 0x758   :  { %v3106_v3 = vadd.f32 %v3105_v51, %v3104_v63 }
 0x75a   :  { %v3112_v19 = vsel %vm3111_vm3, %v3110_v15, %v3106_v3 }
 0x75b   :  { %v3123_v35 = vadd.f32 %v3121_v53, %v3112_v19 }
 0x75d   :  { %3124 = vst [vmem:[#allocation3] sm:$0xf] %v3123_v35 }
 0x75e   :  { %4184 = shalt.err (!%p4181_p4)
}
 0x75f   :  { %s4185_s5 = scalar_lea.hbm %s5685_s8, 64 }
 0x760   :  { %p4186_p5 = scmp.ne.s32.totalorder %s5685_s8, %s4185_s5  ;;  %p4189_p6 = scmp.lt.u32.totalorder %s4185_s5, %s5685_s8 }
 0x762   :  { %p4191_p7 = pnand %p4189_p6, %p4186_p5 }
 0x764   :  { %4194 = shalt.err (!%p4191_p7)
}
 0x765   :  { %3134 = dma.vmem_to_hbm [thread:$0]  %s3132_s26, 64, %s5685_s8, [#allocation4]  }
 0x766   :  { %4195 = dma.done.wait [#allocation4], 64  }
 0x767   :  { %4196 = vsyncadd [#allocation4], 4294967232 }
 0x768   :  { %3138 = vsyncpa [#allocation4], 1 }

</bundles_post_ra>
